<compile_context>
chip_gen: v6e
topology: v6e:2x2x1
jax: 0.10.0
libtpu: 0.0.40
codegen_flags: <defaults>
</compile_context>

<pallas_src>
import functools

import jax
import jax.numpy as jnp
from jax.experimental import pallas as pl
from jax.experimental.pallas import tpu as pltpu


def _round_up(n, m):
    return ((n + m - 1) // m) * m


def _pad_axis(a, axis, new_size):
    pad = new_size - a.shape[axis]
    if pad == 0:
        return a
    widths = [(0, 0)] * a.ndim
    widths[axis] = (0, pad)
    return jnp.pad(a, widths)


def mlp_kernel(x_ref, w1_ref, b1_ref, w2_ref, b2_ref, o_ref):
    # fc1: (tm, In) @ (In, Hid) on the MXU (bf16 operands, f32 accumulate).
    h = jnp.dot(x_ref[...], w1_ref[...], preferred_element_type=jnp.float32)
    # Bias + ReLU in f32 (VPU).
    h = jnp.maximum(h + b1_ref[...], 0.0)
    # fc2 for this output-column tile: back to bf16 for the MXU, f32 accumulate.
    y = jnp.dot(h.astype(w2_ref.dtype), w2_ref[...],
                preferred_element_type=jnp.float32)
    o_ref[...] = (y + b2_ref[...]).astype(o_ref.dtype)


@functools.partial(jax.jit, static_argnames=("tm", "tn", "compute_dtype"))
def mlp_forward(x, w1, b1, w2, b2, *, tm=None, tn=None,
                compute_dtype=jnp.bfloat16):
    """x: (..., In), w1: (In, Hid), b1: (Hid,), w2: (Hid, Out), b2: (Out,)."""
    orig_dtype = x.dtype
    lead_shape = x.shape[:-1]
    In = x.shape[-1]
    Hid = w1.shape[1]
    Out = w2.shape[1]
    x2 = x.reshape(-1, In)
    B = x2.shape[0]

    # ---- pad: lanes (last dims) to 128, sublanes (batch) to 8 ---------------
    In_p = _round_up(In, 128)
    Hid_p = _round_up(Hid, 128)
    Out_p = _round_up(Out, 128)
    B_p = _round_up(max(B, 1), 8)
    x_p = _pad_axis(_pad_axis(x2, 0, B_p), 1, In_p).astype(compute_dtype)
    w1_p = _pad_axis(_pad_axis(w1, 0, In_p), 1, Hid_p).astype(compute_dtype)
    w2_p = _pad_axis(_pad_axis(w2, 0, Hid_p), 1, Out_p).astype(compute_dtype)
    b1_p = _pad_axis(b1, 0, Hid_p).reshape(1, Hid_p).astype(jnp.float32)
    b2_p = _pad_axis(b2, 0, Out_p).reshape(1, Out_p).astype(jnp.float32)

    # ---- tiling --------------------------------------------------------------
    if tm is None:
        tm = min(B_p, 256)            # cap so large batches still pipeline x/out
    tm = _round_up(min(max(int(tm), 8), B_p), 8)
    nb = pl.cdiv(B_p, tm)
    if tn is None:
        if nb >= 2 or Out_p <= 128:
            tn = Out_p                # weights fully resident; parallel over batch
        else:
            tn = 128                  # tiny batch: split fc2 cols for megacore
    tn = int(tn)
    grid = (nb, pl.cdiv(Out_p, tn))

    # ---- explicit VMEM budget (worst case: everything double-buffered) ------
    cbytes = jnp.dtype(compute_dtype).itemsize
    obytes = jnp.dtype(orig_dtype).itemsize
    needed = (2 * tm * In_p * cbytes          # x tiles
              + 2 * In_p * Hid_p * cbytes     # w1
              + 2 * Hid_p * 4                 # b1 (f32)
              + 2 * Hid_p * tn * cbytes       # w2 column slices
              + 2 * tn * 4                    # b2 column slices
              + 2 * tm * tn * obytes          # out tiles
              + 2 * tm * Hid_p * 4)           # f32 fc1 activations + temps
    vmem_limit = int(min(64 << 20, max(32 << 20, 2 * needed)))

    out_p = pl.pallas_call(
        mlp_kernel,
        out_shape=jax.ShapeDtypeStruct((B_p, Out_p), orig_dtype),
        grid_spec=pltpu.PrefetchScalarGridSpec(
            num_scalar_prefetch=0,
            grid=grid,
            in_specs=[
                pl.BlockSpec((tm, In_p), lambda i, j: (i, 0)),       # x row tile
                pl.BlockSpec((In_p, Hid_p), lambda i, j: (0, 0)),    # w1 (resident)
                pl.BlockSpec((1, Hid_p), lambda i, j: (0, 0)),       # b1
                pl.BlockSpec((Hid_p, tn), lambda i, j: (0, j)),      # w2 col slice
                pl.BlockSpec((1, tn), lambda i, j: (0, j)),          # b2 col slice
            ],
            out_specs=pl.BlockSpec((tm, tn), lambda i, j: (i, j)),
        ),
        compiler_params=pltpu.CompilerParams(
            dimension_semantics=("parallel", "parallel"),
            vmem_limit_bytes=vmem_limit,
        ),
    )(x_p, w1_p, b1_p, w2_p, b2_p)

    out = out_p[:B, :Out]
    return out.reshape(*lead_shape, Out)


def mlp_reference(x, w1, b1, w2, b2):
    h = jnp.maximum(x @ w1 + b1, 0.0)
    return h @ w2 + b2


if __name__ == "__main__":
    input_size, hidden_size, output_size = 576, 1024, 576
    batch = 8

    key = jax.random.PRNGKey(0)
    kx, kw1, kb1, kw2, kb2 = jax.random.split(key, 5)

    # Deterministic synthetic parameters (nn.Linear's (out, in) weight kept
    # transposed as (in, out) for the kernel).
    scale1 = 1.0 / jnp.sqrt(input_size)
    scale2 = 1.0 / jnp.sqrt(hidden_size)
    w1 = jax.random.uniform(kw1, (input_size, hidden_size), jnp.float32,
                            -scale1, scale1)
    b1 = jax.random.uniform(kb1, (hidden_size,), jnp.float32, -scale1, scale1)
    w2 = jax.random.uniform(kw2, (hidden_size, output_size), jnp.float32,
                            -scale2, scale2)
    b2 = jax.random.uniform(kb2, (output_size,), jnp.float32, -scale2, scale2)

    x = jax.random.normal(kx, (batch, input_size), jnp.float32)

    out = mlp_forward(x, w1, b1, w2, b2)
    out = jax.block_until_ready(out)

    ref = mlp_reference(x, w1, b1, w2, b2)
    assert out.shape == (batch, output_size)
    # bf16 operands on the MXU (f32 accumulation) -> loosened tolerance.
    assert jnp.allclose(out, ref, atol=2e-2, rtol=2e-2), "mismatch vs reference"

    print("KERNEL_OK")
</pallas_src>

<mosaic_0001>
module attributes {stable_mosaic.version = 11 : i64} {
  func.func @mlp_kernel(%arg0: i32, %arg1: i32, %arg2: memref<8x640xbf16, #tpu.memory_space<vmem>>, %arg3: memref<640x1024xbf16, #tpu.memory_space<vmem>>, %arg4: memref<1x1024xf32, #tpu.memory_space<vmem>>, %arg5: memref<1024x128xbf16, #tpu.memory_space<vmem>>, %arg6: memref<1x128xf32, #tpu.memory_space<vmem>>, %arg7: memref<8x128xf32, #tpu.memory_space<vmem>>) attributes {dimension_semantics = [#tpu.dimension_semantics<parallel>, #tpu.dimension_semantics<parallel>], iteration_bounds = array<i64: 1, 5>, scalar_prefetch = 0 : i64, scratch_operands = 0 : i64, tpu.core_type = #tpu.core_type<tc>, window_params = [{transform_indices = @transform_0, window_bounds = array<i64: 8, 640>}, {pipeline_mode = #tpu.pipeline_mode<synchronous>, transform_indices = @transform_1, window_bounds = array<i64: 640, 1024>}, {pipeline_mode = #tpu.pipeline_mode<synchronous>, transform_indices = @transform_2, window_bounds = array<i64: 1, 1024>}, {transform_indices = @transform_3, window_bounds = array<i64: 1024, 128>}, {transform_indices = @transform_4, window_bounds = array<i64: 1, 128>}, {transform_indices = @transform_5, window_bounds = array<i64: 8, 128>}]} {
    %c0 = arith.constant 0 : index
    %c0_0 = arith.constant 0 : index
    %0 = vector.load %arg2[%c0, %c0_0] : memref<8x640xbf16, #tpu.memory_space<vmem>>, vector<8x640xbf16>
    %c0_1 = arith.constant 0 : index
    %c0_2 = arith.constant 0 : index
    %1 = vector.load %arg3[%c0_1, %c0_2] : memref<640x1024xbf16, #tpu.memory_space<vmem>>, vector<640x1024xbf16>
    %cst = arith.constant dense<0.000000e+00> : vector<8x1024xf32>
    %2 = tpu.matmul %0, %1, %cst {dimension_numbers = #tpu.dot_dimension_numbers<[1], [0], [0], [1], [0, 0, 1, 1], [], []>} : vector<8x640xbf16>, vector<640x1024xbf16>, vector<8x1024xf32> -> vector<8x1024xf32>
    %c0_3 = arith.constant 0 : index
    %c0_4 = arith.constant 0 : index
    %3 = vector.load %arg4[%c0_3, %c0_4] : memref<1x1024xf32, #tpu.memory_space<vmem>>, vector<1x1024xf32>
    %4 = vector.broadcast %3 : vector<1x1024xf32> to vector<8x1024xf32>
    %5 = arith.addf %2, %4 : vector<8x1024xf32>
    %cst_5 = arith.constant 0.000000e+00 : f32
    %6 = vector.broadcast %cst_5 : f32 to vector<8x1024xf32>
    %7 = arith.maximumf %5, %6 : vector<8x1024xf32>
    %8 = arith.truncf %7 : vector<8x1024xf32> to vector<8x1024xbf16>
    %c0_6 = arith.constant 0 : index
    %c0_7 = arith.constant 0 : index
    %9 = vector.load %arg5[%c0_6, %c0_7] : memref<1024x128xbf16, #tpu.memory_space<vmem>>, vector<1024x128xbf16>
    %cst_8 = arith.constant dense<0.000000e+00> : vector<8x128xf32>
    %10 = tpu.matmul %8, %9, %cst_8 {dimension_numbers = #tpu.dot_dimension_numbers<[1], [0], [0], [1], [0, 0, 1, 1], [], []>} : vector<8x1024xbf16>, vector<1024x128xbf16>, vector<8x128xf32> -> vector<8x128xf32>
    %c0_9 = arith.constant 0 : index
    %c0_10 = arith.constant 0 : index
    %11 = vector.load %arg6[%c0_9, %c0_10] : memref<1x128xf32, #tpu.memory_space<vmem>>, vector<1x128xf32>
    %12 = vector.broadcast %11 : vector<1x128xf32> to vector<8x128xf32>
    %13 = arith.addf %10, %12 : vector<8x128xf32>
    %c0_11 = arith.constant 0 : index
    %c0_12 = arith.constant 0 : index
    %14 = vector.load %arg7[%c0_11, %c0_12] : memref<8x128xf32, #tpu.memory_space<vmem>>, vector<8x128xf32>
    tpu.vector_store %arg7[%c0_11, %c0_12], %13 {strides = array<i32>} : memref<8x128xf32, #tpu.memory_space<vmem>>, vector<8x128xf32>,
    return
  }
  func.func @transform_0(%arg0: i32, %arg1: i32) -> (i32, i32) {
    %c0_i32 = arith.constant 0 : i32
    %c0_i32_0 = arith.constant 0 : i32
    return %arg0, %c0_i32 : i32, i32
  }
  func.func @transform_1(%arg0: i32, %arg1: i32) -> (i32, i32) {
    %c0_i32 = arith.constant 0 : i32
    %c0_i32_0 = arith.constant 0 : i32
    %c0_i32_1 = arith.constant 0 : i32
    return %c0_i32, %c0_i32_0 : i32, i32
  }
  func.func @transform_2(%arg0: i32, %arg1: i32) -> (i32, i32) {
    %c0_i32 = arith.constant 0 : i32
    %c0_i32_0 = arith.constant 0 : i32
    %c0_i32_1 = arith.constant 0 : i32
    return %c0_i32, %c0_i32_0 : i32, i32
  }
  func.func @transform_3(%arg0: i32, %arg1: i32) -> (i32, i32) {
    %c0_i32 = arith.constant 0 : i32
    %c0_i32_0 = arith.constant 0 : i32
    return %c0_i32, %arg1 : i32, i32
  }
  func.func @transform_4(%arg0: i32, %arg1: i32) -> (i32, i32) {
    %c0_i32 = arith.constant 0 : i32
    %c0_i32_0 = arith.constant 0 : i32
    return %c0_i32, %arg1 : i32, i32
  }
  func.func @transform_5(%arg0: i32, %arg1: i32) -> (i32, i32) {
    %c0_i32 = arith.constant 0 : i32
    return %arg0, %arg1 : i32, i32
  }
}

</mosaic_0001>

<bundles_post_ra>
// kernel: mlp_forward.1
= control target key start
LH: loop header
LB: loop body
LE: loop exit
PB: predicated region body
PF: predicated region fallthrough
CT: control target
= control target key end

     0   :  { %10 = vsyncpa [#allocation4], 0  ;;  %s6344_s0 = inlined_call_operand.vmem [shape: bf16[8,640], index: 0, kind: input, shape index: {}]   ;;  %s6345_s1 = inlined_call_operand.vmem [shape: bf16[640,1024], index: 1, kind: input, shape index: {}]   ;;  %s6346_s2 = inlined_call_operand.vmem [shape: f32[1,1024], index: 2, kind: input, shape index: {}]   ;;  %s6347_s3 = inlined_call_operand.vmem [shape: bf16[1024,640], index: 3, kind: input, shape index: {}]   ;;  %s6348_s4 = inlined_call_operand.vmem [shape: f32[1,640], index: 4, kind: input, shape index: {}]   ;;  %s6349_s5 = inlined_call_operand.hbm [shape: f32[8,640], index: 5, kind: output, shape index: {}]  }
   0x1   :  { %12 = vsyncpa [#allocation4 + $0x1], 0  ;;  %s4837_s18 = smov 0   ;;  %s4839_s19 = smov 0  }
   0x2   :  { %s4841_s20 = smov 0   ;;  %s4843_s21 = smov 0  }
   0x3   :  { %s4845_s22 = smov 0   ;;  %s4847_s23 = smov 0  }
   0x4 LB: > { %s4109_s24 = sadd.s32 4294967295, %s4803_s23   ;;  %s4110_s25 = sadd.s32 4294967294, %s4803_s23   ;;  %s4803_s23 = sphi %s4847_s23, %s18_s23   ;;  %s4799_s22 = sphi %s4845_s22, %s6356_s22   ;;  %s4795_s21 = sphi %s4843_s21, %s6355_s21   ;;  %s4791_s20 = sphi %s4841_s20, %s6354_s20   ;;  %s4787_s19 = sphi %s4839_s19, %s6353_s19   ;;  %s4783_s18 = sphi %s4837_s18, %s6352_s18  }
   0x5   : > { %s27_s26 = sadd.s32 1, %s4799_s22  ;;  %s105_s27 = sadd.s32 1, %s4791_s20 }
   0x6   : > { %p28_p0 = scmp.ge.s32.totalorder %s27_s26, 5  ;;  %p112_p1 = scmp.ne.s32.totalorder %s4791_s20, %s4787_s19 }
   0x7   : > { %p113_p2 = scmp.eq.s32.totalorder %s4803_s23, 0  ;;  %p170_p3 = scmp.eq.s32.totalorder %s4109_s24, 4 }
   0x8   : > { %s6358_s26 = smov (%p28_p0, %s27_s26), 0  ;;  %p175_p6 = scmp.ne.s32.totalorder %s4787_s19, %s4783_s18 }
   0x9   : > { %p114_p4 = por %p113_p2, %p112_p1  ;;  %p4876_p5 = por %p170_p3, %p112_p1 }
   0xa   : > { %s102_s29 = ssub.s32 %s4799_s22, %s6358_s26  ;;  %p176_p8 = scmp.eq.s32.totalorder %s4110_s25, 4 }
   0xb   : > { %p103_p7 = scmp.eq.s32.totalorder %s102_s29, 0  ;;  %p4113_p10 = scmp.ge.s32.totalorder %s4803_s23, 5 }
   0xc   : > { %p4887_p9 = por %p176_p8, %p175_p6 }
   0xd   : > { %s4885_s30 = scalar_select %p103_p7, %s4791_s20, %s105_s27  }
   0xe   : > { %206 = sbr.rel (%p4113_p10) target bundleno = 108 (0x6c), region = 28 }
  0x13   : > { %209 = sbr.rel (!%p114_p4) target bundleno = 108 (0x6c), region = 32  ;;  %s211_s7 = sand.u32 (%p114_p4), 1, %s4791_s20  }
  0x14   : > { %s4115_s8 = sshll.u32 (%p114_p4), %s4799_s22, 2  ;;  %s4114_s9 = sshll.u32 (%p114_p4), %s211_s7, 9 }
  0x15   : > { %s4897_s12 = scalar_lea.vmem (%p114_p4), %s6347_s3, %s4115_s8  ;;  %s4901_s13 = scalar_lea.vmem (%p114_p4), [#allocation2], %s4114_s9 }
  0x16   : > { %v232_v0 = vld [vmem:[%s4897_s12] sm:$0xf] (%p114_p4)  ;;  %v234_v1 = vld [vmem:[%s4897_s12 + $0x14] sm:$0xf] (%p114_p4)  ;;  %v236_v2 = vld [vmem:[%s4897_s12 + $0x28] sm:$0xf] (%p114_p4) }
  0x17   : > { %233 = vst [vmem:[%s4901_s13] sm:$0xf] (%p114_p4), %v232_v0  ;;  %235 = vst [vmem:[%s4901_s13 + $0x4] sm:$0xf] (%p114_p4), %v234_v1  ;;  %v238_v3 = vld [vmem:[%s4897_s12 + $0x3c] sm:$0xf] (%p114_p4) }
  0x18   : > { %v240_v4 = vld [vmem:[%s4897_s12 + $0x50] sm:$0xf]  ;;  %237 = vst [vmem:[%s4901_s13 + $0x8] sm:$0xf] %v236_v2  ;;  %239 = vst [vmem:[%s4901_s13 + $0xc] sm:$0xf] %v238_v3 }
  0x19   : > { %241 = vst [vmem:[%s4901_s13 + $0x10] sm:$0xf] %v240_v4  ;;  %v242_v5 = vld [vmem:[%s4897_s12 + $0x64] sm:$0xf]  ;;  %v244_v6 = vld [vmem:[%s4897_s12 + $0x78] sm:$0xf] }
  0x1a   : > { %v246_v7 = vld [vmem:[%s4897_s12 + $0x8c] sm:$0xf]  ;;  %243 = vst [vmem:[%s4901_s13 + $0x14] sm:$0xf] %v242_v5  ;;  %245 = vst [vmem:[%s4901_s13 + $0x18] sm:$0xf] %v244_v6 }
  0x1b   : > { %247 = vst [vmem:[%s4901_s13 + $0x1c] sm:$0xf] %v246_v7  ;;  %v248_v8 = vld [vmem:[%s4897_s12 + $0xa0] sm:$0xf]  ;;  %v250_v9 = vld [vmem:[%s4897_s12 + $0xb4] sm:$0xf] }
  0x1c   : > { %v252_v10 = vld [vmem:[%s4897_s12 + $0xc8] sm:$0xf]  ;;  %249 = vst [vmem:[%s4901_s13 + $0x20] sm:$0xf] %v248_v8  ;;  %251 = vst [vmem:[%s4901_s13 + $0x24] sm:$0xf] %v250_v9 }
  0x1d   : > { %253 = vst [vmem:[%s4901_s13 + $0x28] sm:$0xf] %v252_v10  ;;  %v254_v11 = vld [vmem:[%s4897_s12 + $0xdc] sm:$0xf]  ;;  %v256_v12 = vld [vmem:[%s4897_s12 + $0xf0] sm:$0xf] }
  0x1e   : > { %v258_v13 = vld [vmem:[%s4897_s12 + $0x104] sm:$0xf]  ;;  %255 = vst [vmem:[%s4901_s13 + $0x2c] sm:$0xf] %v254_v11  ;;  %257 = vst [vmem:[%s4901_s13 + $0x30] sm:$0xf] %v256_v12 }
  0x1f   : > { %259 = vst [vmem:[%s4901_s13 + $0x34] sm:$0xf] %v258_v13  ;;  %v260_v14 = vld [vmem:[%s4897_s12 + $0x118] sm:$0xf]  ;;  %v262_v15 = vld [vmem:[%s4897_s12 + $0x12c] sm:$0xf] }
  0x20   : > { %v264_v16 = vld [vmem:[%s4897_s12 + $0x140] sm:$0xf]  ;;  %261 = vst [vmem:[%s4901_s13 + $0x38] sm:$0xf] %v260_v14  ;;  %263 = vst [vmem:[%s4901_s13 + $0x3c] sm:$0xf] %v262_v15 }
  0x21   : > { %265 = vst [vmem:[%s4901_s13 + $0x40] sm:$0xf] %v264_v16  ;;  %v266_v17 = vld [vmem:[%s4897_s12 + $0x154] sm:$0xf]  ;;  %v268_v18 = vld [vmem:[%s4897_s12 + $0x168] sm:$0xf] }
  0x22   : > { %v270_v19 = vld [vmem:[%s4897_s12 + $0x17c] sm:$0xf]  ;;  %267 = vst [vmem:[%s4901_s13 + $0x44] sm:$0xf] %v266_v17  ;;  %269 = vst [vmem:[%s4901_s13 + $0x48] sm:$0xf] %v268_v18 }
  0x23   : > { %271 = vst [vmem:[%s4901_s13 + $0x4c] sm:$0xf] %v270_v19  ;;  %v272_v20 = vld [vmem:[%s4897_s12 + $0x190] sm:$0xf]  ;;  %v274_v21 = vld [vmem:[%s4897_s12 + $0x1a4] sm:$0xf] }
  0x24   : > { %v276_v22 = vld [vmem:[%s4897_s12 + $0x1b8] sm:$0xf]  ;;  %273 = vst [vmem:[%s4901_s13 + $0x50] sm:$0xf] %v272_v20  ;;  %275 = vst [vmem:[%s4901_s13 + $0x54] sm:$0xf] %v274_v21 }
  0x25   : > { %277 = vst [vmem:[%s4901_s13 + $0x58] sm:$0xf] %v276_v22  ;;  %v278_v23 = vld [vmem:[%s4897_s12 + $0x1cc] sm:$0xf]  ;;  %v280_v24 = vld [vmem:[%s4897_s12 + $0x1e0] sm:$0xf] }
  0x26   : > { %v282_v25 = vld [vmem:[%s4897_s12 + $0x1f4] sm:$0xf]  ;;  %279 = vst [vmem:[%s4901_s13 + $0x5c] sm:$0xf] %v278_v23  ;;  %281 = vst [vmem:[%s4901_s13 + $0x60] sm:$0xf] %v280_v24 }
  0x27   : > { %283 = vst [vmem:[%s4901_s13 + $0x64] sm:$0xf] %v282_v25  ;;  %v284_v26 = vld [vmem:[%s4897_s12 + $0x208] sm:$0xf]  ;;  %v286_v27 = vld [vmem:[%s4897_s12 + $0x21c] sm:$0xf] }
  0x28   : > { %v288_v28 = vld [vmem:[%s4897_s12 + $0x230] sm:$0xf]  ;;  %285 = vst [vmem:[%s4901_s13 + $0x68] sm:$0xf] %v284_v26  ;;  %287 = vst [vmem:[%s4901_s13 + $0x6c] sm:$0xf] %v286_v27 }
  0x29   : > { %289 = vst [vmem:[%s4901_s13 + $0x70] sm:$0xf] %v288_v28  ;;  %v290_v29 = vld [vmem:[%s4897_s12 + $0x244] sm:$0xf]  ;;  %v292_v30 = vld [vmem:[%s4897_s12 + $0x258] sm:$0xf] }
  0x2a   : > { %v294_v31 = vld [vmem:[%s4897_s12 + $0x26c] sm:$0xf]  ;;  %291 = vst [vmem:[%s4901_s13 + $0x74] sm:$0xf] %v290_v29  ;;  %293 = vst [vmem:[%s4901_s13 + $0x78] sm:$0xf] %v292_v30 }
  0x2b   : > { %295 = vst [vmem:[%s4901_s13 + $0x7c] sm:$0xf] %v294_v31  ;;  %v296_v32 = vld [vmem:[%s4897_s12 + $0x280] sm:$0xf]  ;;  %v298_v33 = vld [vmem:[%s4897_s12 + $0x294] sm:$0xf] }
  0x2c   : > { %v300_v34 = vld [vmem:[%s4897_s12 + $0x2a8] sm:$0xf]  ;;  %297 = vst [vmem:[%s4901_s13 + $0x80] sm:$0xf] %v296_v32  ;;  %299 = vst [vmem:[%s4901_s13 + $0x84] sm:$0xf] %v298_v33 }
  0x2d   : > { %301 = vst [vmem:[%s4901_s13 + $0x88] sm:$0xf] %v300_v34  ;;  %v302_v35 = vld [vmem:[%s4897_s12 + $0x2bc] sm:$0xf]  ;;  %v304_v36 = vld [vmem:[%s4897_s12 + $0x2d0] sm:$0xf] }
  0x2e   : > { %v306_v37 = vld [vmem:[%s4897_s12 + $0x2e4] sm:$0xf]  ;;  %303 = vst [vmem:[%s4901_s13 + $0x8c] sm:$0xf] %v302_v35  ;;  %305 = vst [vmem:[%s4901_s13 + $0x90] sm:$0xf] %v304_v36 }
  0x2f   : > { %307 = vst [vmem:[%s4901_s13 + $0x94] sm:$0xf] %v306_v37  ;;  %v308_v38 = vld [vmem:[%s4897_s12 + $0x2f8] sm:$0xf]  ;;  %v310_v39 = vld [vmem:[%s4897_s12 + $0x30c] sm:$0xf] }
  0x30   : > { %v312_v40 = vld [vmem:[%s4897_s12 + $0x320] sm:$0xf]  ;;  %309 = vst [vmem:[%s4901_s13 + $0x98] sm:$0xf] %v308_v38  ;;  %311 = vst [vmem:[%s4901_s13 + $0x9c] sm:$0xf] %v310_v39 }
  0x31   : > { %313 = vst [vmem:[%s4901_s13 + $0xa0] sm:$0xf] %v312_v40  ;;  %v314_v41 = vld [vmem:[%s4897_s12 + $0x334] sm:$0xf]  ;;  %v316_v42 = vld [vmem:[%s4897_s12 + $0x348] sm:$0xf] }
  0x32   : > { %v318_v43 = vld [vmem:[%s4897_s12 + $0x35c] sm:$0xf]  ;;  %315 = vst [vmem:[%s4901_s13 + $0xa4] sm:$0xf] %v314_v41  ;;  %317 = vst [vmem:[%s4901_s13 + $0xa8] sm:$0xf] %v316_v42 }
  0x33   : > { %319 = vst [vmem:[%s4901_s13 + $0xac] sm:$0xf] %v318_v43  ;;  %v320_v44 = vld [vmem:[%s4897_s12 + $0x370] sm:$0xf]  ;;  %v322_v45 = vld [vmem:[%s4897_s12 + $0x384] sm:$0xf] }
  0x34   : > { %v324_v46 = vld [vmem:[%s4897_s12 + $0x398] sm:$0xf]  ;;  %321 = vst [vmem:[%s4901_s13 + $0xb0] sm:$0xf] %v320_v44  ;;  %323 = vst [vmem:[%s4901_s13 + $0xb4] sm:$0xf] %v322_v45 }
  0x35   : > { %325 = vst [vmem:[%s4901_s13 + $0xb8] sm:$0xf] %v324_v46  ;;  %v326_v47 = vld [vmem:[%s4897_s12 + $0x3ac] sm:$0xf]  ;;  %v328_v48 = vld [vmem:[%s4897_s12 + $0x3c0] sm:$0xf] }
  0x36   : > { %v330_v49 = vld [vmem:[%s4897_s12 + $0x3d4] sm:$0xf]  ;;  %327 = vst [vmem:[%s4901_s13 + $0xbc] sm:$0xf] %v326_v47  ;;  %329 = vst [vmem:[%s4901_s13 + $0xc0] sm:$0xf] %v328_v48 }
  0x37   : > { %331 = vst [vmem:[%s4901_s13 + $0xc4] sm:$0xf] %v330_v49  ;;  %v332_v50 = vld [vmem:[%s4897_s12 + $0x3e8] sm:$0xf]  ;;  %v334_v51 = vld [vmem:[%s4897_s12 + $0x3fc] sm:$0xf] }
  0x38   : > { %v336_v52 = vld [vmem:[%s4897_s12 + $0x410] sm:$0xf]  ;;  %333 = vst [vmem:[%s4901_s13 + $0xc8] sm:$0xf] %v332_v50  ;;  %335 = vst [vmem:[%s4901_s13 + $0xcc] sm:$0xf] %v334_v51 }
  0x39   : > { %337 = vst [vmem:[%s4901_s13 + $0xd0] sm:$0xf] %v336_v52  ;;  %v338_v53 = vld [vmem:[%s4897_s12 + $0x424] sm:$0xf]  ;;  %v340_v54 = vld [vmem:[%s4897_s12 + $0x438] sm:$0xf] }
  0x3a   : > { %v342_v55 = vld [vmem:[%s4897_s12 + $0x44c] sm:$0xf]  ;;  %339 = vst [vmem:[%s4901_s13 + $0xd4] sm:$0xf] %v338_v53  ;;  %341 = vst [vmem:[%s4901_s13 + $0xd8] sm:$0xf] %v340_v54 }
  0x3b   : > { %343 = vst [vmem:[%s4901_s13 + $0xdc] sm:$0xf] %v342_v55  ;;  %v344_v56 = vld [vmem:[%s4897_s12 + $0x460] sm:$0xf]  ;;  %v346_v57 = vld [vmem:[%s4897_s12 + $0x474] sm:$0xf] }
  0x3c   : > { %v348_v58 = vld [vmem:[%s4897_s12 + $0x488] sm:$0xf]  ;;  %345 = vst [vmem:[%s4901_s13 + $0xe0] sm:$0xf] %v344_v56  ;;  %347 = vst [vmem:[%s4901_s13 + $0xe4] sm:$0xf] %v346_v57 }
  0x3d   : > { %349 = vst [vmem:[%s4901_s13 + $0xe8] sm:$0xf] %v348_v58  ;;  %v350_v59 = vld [vmem:[%s4897_s12 + $0x49c] sm:$0xf]  ;;  %v352_v60 = vld [vmem:[%s4897_s12 + $0x4b0] sm:$0xf] }
  0x3e   : > { %v354_v61 = vld [vmem:[%s4897_s12 + $0x4c4] sm:$0xf]  ;;  %351 = vst [vmem:[%s4901_s13 + $0xec] sm:$0xf] %v350_v59  ;;  %353 = vst [vmem:[%s4901_s13 + $0xf0] sm:$0xf] %v352_v60 }
  0x3f   : > { %355 = vst [vmem:[%s4901_s13 + $0xf4] sm:$0xf] %v354_v61  ;;  %v356_v62 = vld [vmem:[%s4897_s12 + $0x4d8] sm:$0xf]  ;;  %v358_v63 = vld [vmem:[%s4897_s12 + $0x4ec] sm:$0xf] }
  0x40   : > { %v360_v0 = vld [vmem:[%s4897_s12 + $0x500] sm:$0xf]  ;;  %357 = vst [vmem:[%s4901_s13 + $0xf8] sm:$0xf] %v356_v62  ;;  %359 = vst [vmem:[%s4901_s13 + $0xfc] sm:$0xf] %v358_v63 }
  0x41   : > { %361 = vst [vmem:[%s4901_s13 + $0x100] sm:$0xf] %v360_v0  ;;  %v362_v1 = vld [vmem:[%s4897_s12 + $0x514] sm:$0xf]  ;;  %v364_v2 = vld [vmem:[%s4897_s12 + $0x528] sm:$0xf] }
  0x42   : > { %v366_v3 = vld [vmem:[%s4897_s12 + $0x53c] sm:$0xf]  ;;  %363 = vst [vmem:[%s4901_s13 + $0x104] sm:$0xf] %v362_v1  ;;  %365 = vst [vmem:[%s4901_s13 + $0x108] sm:$0xf] %v364_v2 }
  0x43   : > { %367 = vst [vmem:[%s4901_s13 + $0x10c] sm:$0xf] %v366_v3  ;;  %v368_v4 = vld [vmem:[%s4897_s12 + $0x550] sm:$0xf]  ;;  %v370_v5 = vld [vmem:[%s4897_s12 + $0x564] sm:$0xf] }
  0x44   : > { %v372_v6 = vld [vmem:[%s4897_s12 + $0x578] sm:$0xf]  ;;  %369 = vst [vmem:[%s4901_s13 + $0x110] sm:$0xf] %v368_v4  ;;  %371 = vst [vmem:[%s4901_s13 + $0x114] sm:$0xf] %v370_v5 }
  0x45   : > { %373 = vst [vmem:[%s4901_s13 + $0x118] sm:$0xf] %v372_v6  ;;  %v374_v7 = vld [vmem:[%s4897_s12 + $0x58c] sm:$0xf]  ;;  %v376_v8 = vld [vmem:[%s4897_s12 + $0x5a0] sm:$0xf] }
  0x46   : > { %v378_v9 = vld [vmem:[%s4897_s12 + $0x5b4] sm:$0xf]  ;;  %375 = vst [vmem:[%s4901_s13 + $0x11c] sm:$0xf] %v374_v7  ;;  %377 = vst [vmem:[%s4901_s13 + $0x120] sm:$0xf] %v376_v8 }
  0x47   : > { %379 = vst [vmem:[%s4901_s13 + $0x124] sm:$0xf] %v378_v9  ;;  %v380_v10 = vld [vmem:[%s4897_s12 + $0x5c8] sm:$0xf]  ;;  %v382_v11 = vld [vmem:[%s4897_s12 + $0x5dc] sm:$0xf] }
  0x48   : > { %v384_v12 = vld [vmem:[%s4897_s12 + $0x5f0] sm:$0xf]  ;;  %381 = vst [vmem:[%s4901_s13 + $0x128] sm:$0xf] %v380_v10  ;;  %383 = vst [vmem:[%s4901_s13 + $0x12c] sm:$0xf] %v382_v11 }
  0x49   : > { %385 = vst [vmem:[%s4901_s13 + $0x130] sm:$0xf] %v384_v12  ;;  %v386_v13 = vld [vmem:[%s4897_s12 + $0x604] sm:$0xf]  ;;  %v388_v14 = vld [vmem:[%s4897_s12 + $0x618] sm:$0xf] }
  0x4a   : > { %v390_v15 = vld [vmem:[%s4897_s12 + $0x62c] sm:$0xf]  ;;  %387 = vst [vmem:[%s4901_s13 + $0x134] sm:$0xf] %v386_v13  ;;  %389 = vst [vmem:[%s4901_s13 + $0x138] sm:$0xf] %v388_v14 }
  0x4b   : > { %391 = vst [vmem:[%s4901_s13 + $0x13c] sm:$0xf] %v390_v15  ;;  %v392_v16 = vld [vmem:[%s4897_s12 + $0x640] sm:$0xf]  ;;  %v394_v17 = vld [vmem:[%s4897_s12 + $0x654] sm:$0xf] }
  0x4c   : > { %v396_v18 = vld [vmem:[%s4897_s12 + $0x668] sm:$0xf]  ;;  %393 = vst [vmem:[%s4901_s13 + $0x140] sm:$0xf] %v392_v16  ;;  %395 = vst [vmem:[%s4901_s13 + $0x144] sm:$0xf] %v394_v17 }
  0x4d   : > { %397 = vst [vmem:[%s4901_s13 + $0x148] sm:$0xf] %v396_v18  ;;  %v398_v19 = vld [vmem:[%s4897_s12 + $0x67c] sm:$0xf]  ;;  %v400_v20 = vld [vmem:[%s4897_s12 + $0x690] sm:$0xf] }
  0x4e   : > { %v402_v21 = vld [vmem:[%s4897_s12 + $0x6a4] sm:$0xf]  ;;  %399 = vst [vmem:[%s4901_s13 + $0x14c] sm:$0xf] %v398_v19  ;;  %401 = vst [vmem:[%s4901_s13 + $0x150] sm:$0xf] %v400_v20 }
  0x4f   : > { %403 = vst [vmem:[%s4901_s13 + $0x154] sm:$0xf] %v402_v21  ;;  %v404_v22 = vld [vmem:[%s4897_s12 + $0x6b8] sm:$0xf]  ;;  %v406_v23 = vld [vmem:[%s4897_s12 + $0x6cc] sm:$0xf] }
  0x50   : > { %v408_v24 = vld [vmem:[%s4897_s12 + $0x6e0] sm:$0xf]  ;;  %405 = vst [vmem:[%s4901_s13 + $0x158] sm:$0xf] %v404_v22  ;;  %407 = vst [vmem:[%s4901_s13 + $0x15c] sm:$0xf] %v406_v23 }
  0x51   : > { %409 = vst [vmem:[%s4901_s13 + $0x160] sm:$0xf] %v408_v24  ;;  %v410_v25 = vld [vmem:[%s4897_s12 + $0x6f4] sm:$0xf]  ;;  %v412_v26 = vld [vmem:[%s4897_s12 + $0x708] sm:$0xf] }
  0x52   : > { %v414_v27 = vld [vmem:[%s4897_s12 + $0x71c] sm:$0xf]  ;;  %411 = vst [vmem:[%s4901_s13 + $0x164] sm:$0xf] %v410_v25  ;;  %413 = vst [vmem:[%s4901_s13 + $0x168] sm:$0xf] %v412_v26 }
  0x53   : > { %415 = vst [vmem:[%s4901_s13 + $0x16c] sm:$0xf] %v414_v27  ;;  %v416_v28 = vld [vmem:[%s4897_s12 + $0x730] sm:$0xf]  ;;  %v418_v29 = vld [vmem:[%s4897_s12 + $0x744] sm:$0xf] }
  0x54   : > { %v420_v30 = vld [vmem:[%s4897_s12 + $0x758] sm:$0xf]  ;;  %417 = vst [vmem:[%s4901_s13 + $0x170] sm:$0xf] %v416_v28  ;;  %419 = vst [vmem:[%s4901_s13 + $0x174] sm:$0xf] %v418_v29 }
  0x55   : > { %421 = vst [vmem:[%s4901_s13 + $0x178] sm:$0xf] %v420_v30  ;;  %v422_v31 = vld [vmem:[%s4897_s12 + $0x76c] sm:$0xf]  ;;  %v424_v32 = vld [vmem:[%s4897_s12 + $0x780] sm:$0xf] }
  0x56   : > { %v426_v33 = vld [vmem:[%s4897_s12 + $0x794] sm:$0xf]  ;;  %423 = vst [vmem:[%s4901_s13 + $0x17c] sm:$0xf] %v422_v31  ;;  %425 = vst [vmem:[%s4901_s13 + $0x180] sm:$0xf] %v424_v32 }
  0x57   : > { %427 = vst [vmem:[%s4901_s13 + $0x184] sm:$0xf] %v426_v33  ;;  %v428_v34 = vld [vmem:[%s4897_s12 + $0x7a8] sm:$0xf]  ;;  %v430_v35 = vld [vmem:[%s4897_s12 + $0x7bc] sm:$0xf] }
  0x58   : > { %v432_v36 = vld [vmem:[%s4897_s12 + $0x7d0] sm:$0xf]  ;;  %429 = vst [vmem:[%s4901_s13 + $0x188] sm:$0xf] %v428_v34  ;;  %431 = vst [vmem:[%s4901_s13 + $0x18c] sm:$0xf] %v430_v35 }
  0x59   : > { %433 = vst [vmem:[%s4901_s13 + $0x190] sm:$0xf] %v432_v36  ;;  %v434_v37 = vld [vmem:[%s4897_s12 + $0x7e4] sm:$0xf]  ;;  %v436_v38 = vld [vmem:[%s4897_s12 + $0x7f8] sm:$0xf] }
  0x5a   : > { %v438_v39 = vld [vmem:[%s4897_s12 + $0x80c] sm:$0xf]  ;;  %435 = vst [vmem:[%s4901_s13 + $0x194] sm:$0xf] %v434_v37  ;;  %437 = vst [vmem:[%s4901_s13 + $0x198] sm:$0xf] %v436_v38 }
  0x5b   : > { %439 = vst [vmem:[%s4901_s13 + $0x19c] sm:$0xf] %v438_v39  ;;  %v440_v40 = vld [vmem:[%s4897_s12 + $0x820] sm:$0xf]  ;;  %v442_v41 = vld [vmem:[%s4897_s12 + $0x834] sm:$0xf] }
  0x5c   : > { %v444_v42 = vld [vmem:[%s4897_s12 + $0x848] sm:$0xf]  ;;  %441 = vst [vmem:[%s4901_s13 + $0x1a0] sm:$0xf] %v440_v40  ;;  %443 = vst [vmem:[%s4901_s13 + $0x1a4] sm:$0xf] %v442_v41 }
  0x5d   : > { %445 = vst [vmem:[%s4901_s13 + $0x1a8] sm:$0xf] %v444_v42  ;;  %v446_v43 = vld [vmem:[%s4897_s12 + $0x85c] sm:$0xf]  ;;  %v448_v44 = vld [vmem:[%s4897_s12 + $0x870] sm:$0xf] }
  0x5e   : > { %v450_v45 = vld [vmem:[%s4897_s12 + $0x884] sm:$0xf]  ;;  %447 = vst [vmem:[%s4901_s13 + $0x1ac] sm:$0xf] %v446_v43  ;;  %449 = vst [vmem:[%s4901_s13 + $0x1b0] sm:$0xf] %v448_v44 }
  0x5f   : > { %451 = vst [vmem:[%s4901_s13 + $0x1b4] sm:$0xf] %v450_v45  ;;  %v452_v46 = vld [vmem:[%s4897_s12 + $0x898] sm:$0xf]  ;;  %v454_v47 = vld [vmem:[%s4897_s12 + $0x8ac] sm:$0xf] }
  0x60   : > { %v456_v48 = vld [vmem:[%s4897_s12 + $0x8c0] sm:$0xf]  ;;  %453 = vst [vmem:[%s4901_s13 + $0x1b8] sm:$0xf] %v452_v46  ;;  %455 = vst [vmem:[%s4901_s13 + $0x1bc] sm:$0xf] %v454_v47 }
  0x61   : > { %457 = vst [vmem:[%s4901_s13 + $0x1c0] sm:$0xf] %v456_v48  ;;  %v458_v49 = vld [vmem:[%s4897_s12 + $0x8d4] sm:$0xf]  ;;  %v460_v50 = vld [vmem:[%s4897_s12 + $0x8e8] sm:$0xf] }
  0x62   : > { %v462_v51 = vld [vmem:[%s4897_s12 + $0x8fc] sm:$0xf]  ;;  %459 = vst [vmem:[%s4901_s13 + $0x1c4] sm:$0xf] %v458_v49  ;;  %461 = vst [vmem:[%s4901_s13 + $0x1c8] sm:$0xf] %v460_v50 }
  0x63   : > { %463 = vst [vmem:[%s4901_s13 + $0x1cc] sm:$0xf] %v462_v51  ;;  %v464_v52 = vld [vmem:[%s4897_s12 + $0x910] sm:$0xf]  ;;  %v466_v53 = vld [vmem:[%s4897_s12 + $0x924] sm:$0xf] }
  0x64   : > { %v468_v54 = vld [vmem:[%s4897_s12 + $0x938] sm:$0xf]  ;;  %465 = vst [vmem:[%s4901_s13 + $0x1d0] sm:$0xf] %v464_v52  ;;  %467 = vst [vmem:[%s4901_s13 + $0x1d4] sm:$0xf] %v466_v53 }
  0x65   : > { %469 = vst [vmem:[%s4901_s13 + $0x1d8] sm:$0xf] %v468_v54  ;;  %v470_v55 = vld [vmem:[%s4897_s12 + $0x94c] sm:$0xf]  ;;  %v472_v56 = vld [vmem:[%s4897_s12 + $0x960] sm:$0xf] }
  0x66   : > { %v474_v57 = vld [vmem:[%s4897_s12 + $0x974] sm:$0xf]  ;;  %471 = vst [vmem:[%s4901_s13 + $0x1dc] sm:$0xf] %v470_v55  ;;  %473 = vst [vmem:[%s4901_s13 + $0x1e0] sm:$0xf] %v472_v56 }
  0x67   : > { %475 = vst [vmem:[%s4901_s13 + $0x1e4] sm:$0xf] %v474_v57  ;;  %v476_v58 = vld [vmem:[%s4897_s12 + $0x988] sm:$0xf]  ;;  %v478_v59 = vld [vmem:[%s4897_s12 + $0x99c] sm:$0xf] }
  0x68   : > { %v480_v60 = vld [vmem:[%s4897_s12 + $0x9b0] sm:$0xf]  ;;  %477 = vst [vmem:[%s4901_s13 + $0x1e8] sm:$0xf] %v476_v58  ;;  %479 = vst [vmem:[%s4901_s13 + $0x1ec] sm:$0xf] %v478_v59 }
  0x69   : > { %481 = vst [vmem:[%s4901_s13 + $0x1f0] sm:$0xf] %v480_v60  ;;  %v482_v61 = vld [vmem:[%s4897_s12 + $0x9c4] sm:$0xf]  ;;  %v484_v62 = vld [vmem:[%s4897_s12 + $0x9d8] sm:$0xf] }
  0x6a   : > { %v486_v63 = vld [vmem:[%s4897_s12 + $0x9ec] sm:$0xf]  ;;  %483 = vst [vmem:[%s4901_s13 + $0x1f4] sm:$0xf] %v482_v61  ;;  %485 = vst [vmem:[%s4901_s13 + $0x1f8] sm:$0xf] %v484_v62 }
  0x6b   : > { %487 = vst [vmem:[%s4901_s13 + $0x1fc] sm:$0xf] %v486_v63 }
  0x6c PF: > { %p4116_p11 = scmp.ge.s32.totalorder %s4803_s23, 1  ;;  %p772_p12 = scmp.lt.s32.totalorder %s4803_s23, 6 }
  0x6e   : > { %p773_p13 = pnand %p4116_p11, %p772_p12 }
  0x6f   : > { %s5805_s15 = sand.u32 (!%p773_p13), 1, %s4787_s19   ;;  %p819_p0 = scmp.lt.s32.totalorder (!%p773_p13), %s4795_s21, 4 }
  0x70   : > { %776 = sbr.rel (%p773_p13) target bundleno = 859 (0x35b), region = 77  ;;  %s4117_s16 = sshll.u32 (!%p773_p13), %s5805_s15, 9 }
  0x71   : > { %s5817_s8 = scalar_lea.vmem (!%p773_p13), [#allocation2], %s4117_s16  ;;  %s4118_s17 = sshll.u32 (!%p773_p13), %s5805_s15, 3 }
  0x72   : > { %s4510_s24 = sshll.u32 (!%p773_p13), %s4795_s21, 7  ;;  %s813_s25 = scalar_lea.vmem (!%p773_p13), [#allocation3], %s4118_s17 }
  0x73   : > { %s4010_s27 = sshll.u32 (!%p773_p13), %s813_s25, 4  ;;  %s6303_s9 = scalar_lea.hbm (!%p773_p13), %s6349_s5, %s4510_s24  ;;  %s4011_s27 = int_to_ptr.vmem [resolvable:$true] %s4010_s27 }
  0x74   : > { %s3995_s10 = scalar_lea.sflag (!%p773_p13), [#allocation4], %s5805_s15  ;;  %s4727_s11 = scalar_lea.vmem (!%p773_p13), %s4011_s27, 128 }
  0x75   : > { %v882_v0 = vld [vmem:[%s6345_s1 + $0x1c0] sm:$0xff]  ;;  %v5251_v54 = vld [vmem:[%s6344_s0 + $0x8] sm:$0xff]  ;;  %p4728_p1 = scmp.ne.s32.totalorder %s4011_s27, %s4727_s11 }
  0x76   : > { %v886_v1 = vld [vmem:[%s6345_s1 + $0x1e0] sm:$0xff]  ;;  %v5265_v59 = vcombine.high %v5251_v54, %v5251_v54 }
  0x77   : > { %v1010_v2 = vld [vmem:[%s6345_s1 + $0x5c0] sm:$0xff]  ;;  %v4181_v3 = vcombine.high %v882_v0, %v886_v1  ;;  %v4180_v5 = vcombine.low %v882_v0, %v886_v1  ;;  %p4729_p2 = pnand %p4728_p1, %p4876_p5 }
  0x78   : > { %v1014_v4 = vld [vmem:[%s6345_s1 + $0x5e0] sm:$0xff]  ;;  %2879 = vmatprep.mubr.bf16.mxu1 %v5265_v59 }
  0x79   : > { %v874_v6 = vld [vmem:[%s6345_s1 + $0x180] sm:$0xff]  ;;  %v4309_v8 = vcombine.high %v1010_v2, %v1014_v4  ;;  %v4308_v9 = vcombine.low %v1010_v2, %v1014_v4  ;;  %2806 = vmatprep.subr.bf16.mxu0 %v4181_v3  ;;  %p4730_p3 = pneg %p4729_p2 }
  0x7a   : > { %v878_v7 = vld [vmem:[%s6345_s1 + $0x1a0] sm:$0xff]  ;;  %2807 = vmatpush1.bf16.msra.mxu0 %v4180_v5 }
  0x7b   : > { %v4173_v10 = vcombine.high %v874_v6, %v878_v7  ;;  %v1002_v11 = vld [vmem:[%s6345_s1 + $0x580] sm:$0xff]  ;;  %2847 = vmatprep.subr.bf16.mxu1 %v4309_v8  ;;  %v4172_v18 = vcombine.low %v874_v6, %v878_v7 }
  0x7c   : > { %v1006_v12 = vld [vmem:[%s6345_s1 + $0x5a0] sm:$0xff]  ;;  %2848 = vmatpush1.bf16.msra.mxu1 %v4308_v9 }
  0x7d   : > { %v866_v13 = vld [vmem:[%s6345_s1 + $0x140] sm:$0xff]  ;;  %v4301_v14 = vcombine.high %v1002_v11, %v1006_v12  ;;  %2808 = vmatprep.subr.bf16.mxu0 %v4173_v10  ;;  %v4300_v19 = vcombine.low %v1002_v11, %v1006_v12 }
  0x7e   : > { %v870_v15 = vld [vmem:[%s6345_s1 + $0x160] sm:$0xff]  ;;  %2809 = vmatpush1.bf16.msra.mxu0 %v4172_v18 }
  0x7f   : > { %v994_v16 = vld [vmem:[%s6345_s1 + $0x540] sm:$0xff]  ;;  %v4165_v20 = vcombine.high %v866_v13, %v870_v15  ;;  %2849 = vmatprep.subr.bf16.mxu1 %v4301_v14  ;;  %v4164_v26 = vcombine.low %v866_v13, %v870_v15 }
  0x80   : > { %v998_v17 = vld [vmem:[%s6345_s1 + $0x560] sm:$0xff]  ;;  %2850 = vmatpush1.bf16.msra.mxu1 %v4300_v19 }
  0x81   : > { %v4293_v21 = vcombine.high %v994_v16, %v998_v17  ;;  %v858_v22 = vld [vmem:[%s6345_s1 + $0x100] sm:$0xff]  ;;  %2810 = vmatprep.subr.bf16.mxu0 %v4165_v20  ;;  %v4292_v27 = vcombine.low %v994_v16, %v998_v17 }
  0x82   : > { %v862_v23 = vld [vmem:[%s6345_s1 + $0x120] sm:$0xff]  ;;  %2811 = vmatpush1.bf16.msra.mxu0 %v4164_v26 }
  0x83   : > { %v986_v24 = vld [vmem:[%s6345_s1 + $0x500] sm:$0xff]  ;;  %v4157_v28 = vcombine.high %v858_v22, %v862_v23  ;;  %2851 = vmatprep.subr.bf16.mxu1 %v4293_v21  ;;  %v4156_v34 = vcombine.low %v858_v22, %v862_v23 }
  0x84   : > { %v990_v25 = vld [vmem:[%s6345_s1 + $0x520] sm:$0xff]  ;;  %2852 = vmatpush1.bf16.msra.mxu1 %v4292_v27 }
  0x85   : > { %v4285_v29 = vcombine.high %v986_v24, %v990_v25  ;;  %v850_v30 = vld [vmem:[%s6345_s1 + $0xc0] sm:$0xff]  ;;  %2812 = vmatprep.subr.bf16.mxu0 %v4157_v28  ;;  %v4284_v35 = vcombine.low %v986_v24, %v990_v25 }
  0x86   : > { %v854_v31 = vld [vmem:[%s6345_s1 + $0xe0] sm:$0xff]  ;;  %2813 = vmatpush1.bf16.msra.mxu0 %v4156_v34 }
  0x87   : > { %v978_v32 = vld [vmem:[%s6345_s1 + $0x4c0] sm:$0xff]  ;;  %v4149_v36 = vcombine.high %v850_v30, %v854_v31  ;;  %2853 = vmatprep.subr.bf16.mxu1 %v4285_v29  ;;  %v4148_v42 = vcombine.low %v850_v30, %v854_v31 }
  0x88   : > { %v982_v33 = vld [vmem:[%s6345_s1 + $0x4e0] sm:$0xff]  ;;  %2854 = vmatpush1.bf16.msra.mxu1 %v4284_v35 }
  0x89   : > { %v4277_v37 = vcombine.high %v978_v32, %v982_v33  ;;  %v842_v38 = vld [vmem:[%s6345_s1 + $0x80] sm:$0xff]  ;;  %2814 = vmatprep.subr.bf16.mxu0 %v4149_v36  ;;  %v4276_v43 = vcombine.low %v978_v32, %v982_v33 }
  0x8a   : > { %v846_v39 = vld [vmem:[%s6345_s1 + $0xa0] sm:$0xff]  ;;  %2815 = vmatpush1.bf16.msra.mxu0 %v4148_v42 }
  0x8b   : > { %v970_v40 = vld [vmem:[%s6345_s1 + $0x480] sm:$0xff]  ;;  %v4141_v44 = vcombine.high %v842_v38, %v846_v39  ;;  %2855 = vmatprep.subr.bf16.mxu1 %v4277_v37  ;;  %v4140_v50 = vcombine.low %v842_v38, %v846_v39 }
  0x8c   : > { %v974_v41 = vld [vmem:[%s6345_s1 + $0x4a0] sm:$0xff]  ;;  %2856 = vmatpush1.bf16.msra.mxu1 %v4276_v43 }
  0x8d   : > { %v4269_v45 = vcombine.high %v970_v40, %v974_v41  ;;  %v834_v46 = vld [vmem:[%s6345_s1 + $0x40] sm:$0xff]  ;;  %2816 = vmatprep.subr.bf16.mxu0 %v4141_v44  ;;  %v4268_v51 = vcombine.low %v970_v40, %v974_v41 }
  0x8e   : > { %v838_v47 = vld [vmem:[%s6345_s1 + $0x60] sm:$0xff]  ;;  %2817 = vmatpush1.bf16.msra.mxu0 %v4140_v50 }
  0x8f   : > { %v962_v48 = vld [vmem:[%s6345_s1 + $0x440] sm:$0xff]  ;;  %v4133_v52 = vcombine.high %v834_v46, %v838_v47  ;;  %2857 = vmatprep.subr.bf16.mxu1 %v4269_v45  ;;  %v4132_v62 = vcombine.low %v834_v46, %v838_v47 }
  0x90   : > { %v966_v49 = vld [vmem:[%s6345_s1 + $0x460] sm:$0xff]  ;;  %2858 = vmatpush1.bf16.msra.mxu1 %v4268_v51 }
  0x91   : > { %v5246_v53 = vld [vmem:[%s6344_s0] sm:$0xff]  ;;  %v4261_v55 = vcombine.high %v962_v48, %v966_v49  ;;  %2818 = vmatprep.subr.bf16.mxu0 %v4133_v52  ;;  %v4260_v63 = vcombine.low %v962_v48, %v966_v49 }
  0x92   : > { %v826_v56 = vld [vmem:[%s6345_s1] sm:$0xff]  ;;  %v5261_v58 = vcombine.high %v5246_v53, %v5246_v53  ;;  %2819 = vmatpush1.bf16.msra.mxu0 %v4132_v62 }
  0x93   : > { %v830_v57 = vld [vmem:[%s6345_s1 + $0x20] sm:$0xff]  ;;  %2859 = vmatprep.subr.bf16.mxu1 %v4261_v55 }
  0x94   : > { %v954_v60 = vld [vmem:[%s6345_s1 + $0x400] sm:$0xff]  ;;  %2838 = vmatprep.mubr.bf16.mxu0 %v5261_v58  ;;  %v4125_v0 = vcombine.high %v826_v56, %v830_v57  ;;  %v4124_v6 = vcombine.low %v826_v56, %v830_v57  ;;  %2860 = vmatpush1.bf16.msra.mxu1 %v4260_v63 }
  0x95   : > { %v958_v61 = vld [vmem:[%s6345_s1 + $0x420] sm:$0xff] }
  0x96   : > { %v4253_v1 = vcombine.high %v954_v60, %v958_v61  ;;  %v946_v2 = vld [vmem:[%s6345_s1 + $0x3c0] sm:$0xff]  ;;  %2820 = vmatprep.subr.bf16.mxu0 %v4125_v0  ;;  %v4252_v7 = vcombine.low %v954_v60, %v958_v61 }
  0x97   : > { %v950_v3 = vld [vmem:[%s6345_s1 + $0x3e0] sm:$0xff]  ;;  %2821 = vmatpush1.bf16.msra.mxu0 %v4124_v6 }
  0x98   : > { %v1074_v4 = vld [vmem:[%s6345_s1 + $0x7c0] sm:$0xff]  ;;  %v4245_v8 = vcombine.high %v946_v2, %v950_v3  ;;  %2861 = vmatprep.subr.bf16.mxu1 %v4253_v1  ;;  %v4244_v14 = vcombine.low %v946_v2, %v950_v3 }
  0x99   : > { %v1078_v5 = vld [vmem:[%s6345_s1 + $0x7e0] sm:$0xff]  ;;  %2862 = vmatpush1.bf16.msra.mxu1 %v4252_v7 }
  0x9a   : > { %v4373_v9 = vcombine.high %v1074_v4, %v1078_v5  ;;  %v938_v10 = vld [vmem:[%s6345_s1 + $0x380] sm:$0xff]  ;;  %2822 = vmatprep.subr.bf16.mxu0 %v4245_v8  ;;  %v4372_v15 = vcombine.low %v1074_v4, %v1078_v5  ;;  %v883_v8 = vld [vmem:[%s6345_s1 + $0x1c8] sm:$0xff] }
  0x9b   : > { %v942_v11 = vld [vmem:[%s6345_s1 + $0x3a0] sm:$0xff]  ;;  %2823 = vmatpush2.bf16.msra.mxu0 %v4244_v14 }
  0x9c   : > { %v1066_v12 = vld [vmem:[%s6345_s1 + $0x780] sm:$0xff]  ;;  %v4237_v16 = vcombine.high %v938_v10, %v942_v11  ;;  %2863 = vmatprep.subr.bf16.mxu1 %v4373_v9  ;;  %v4236_v22 = vcombine.low %v938_v10, %v942_v11  ;;  %v887_v9 = vld [vmem:[%s6345_s1 + $0x1e8] sm:$0xff] }
  0x9d   : > { %v1070_v13 = vld [vmem:[%s6345_s1 + $0x7a0] sm:$0xff]  ;;  %2864 = vmatpush2.bf16.msra.mxu1 %v4372_v15 }
  0x9e   : > { %v4365_v17 = vcombine.high %v1066_v12, %v1070_v13  ;;  %v930_v18 = vld [vmem:[%s6345_s1 + $0x340] sm:$0xff]  ;;  %2824 = vmatprep.subr.bf16.mxu0 %v4237_v16  ;;  %v4364_v23 = vcombine.low %v1066_v12, %v1070_v13  ;;  %v4183_v13 = vcombine.high %v883_v8, %v887_v9  ;;  %v5391_v16 = vcombine.low %v5246_v53, %v5246_v53 }
  0x9f   : > { %v934_v19 = vld [vmem:[%s6345_s1 + $0x360] sm:$0xff]  ;;  %2825 = vmatpush2.bf16.msra.mxu0 %v4236_v22 }
  0xa0   : > { %v1058_v20 = vld [vmem:[%s6345_s1 + $0x740] sm:$0xff]  ;;  %v4229_v24 = vcombine.high %v930_v18, %v934_v19  ;;  %2865 = vmatprep.subr.bf16.mxu1 %v4365_v17  ;;  %v4228_v30 = vcombine.low %v930_v18, %v934_v19  ;;  %v875_v17 = vld [vmem:[%s6345_s1 + $0x188] sm:$0xff]  ;;  %v5401_v19 = vcombine.low %v5251_v54, %v5251_v54 }
  0xa1   : > { %v1062_v21 = vld [vmem:[%s6345_s1 + $0x760] sm:$0xff]  ;;  %2866 = vmatpush2.bf16.msra.mxu1 %v4364_v23  ;;  %v879_v18 = vld [vmem:[%s6345_s1 + $0x1a8] sm:$0xff] }
  0xa2   : > { %v4357_v25 = vcombine.high %v1058_v20, %v1062_v21  ;;  %v922_v26 = vld [vmem:[%s6345_s1 + $0x300] sm:$0xff]  ;;  %2826 = vmatprep.subr.bf16.mxu0 %v4229_v24  ;;  %v4356_v31 = vcombine.low %v1058_v20, %v1062_v21  ;;  %v4182_v21 = vcombine.low %v883_v8, %v887_v9  ;;  %v4175_v53 = vcombine.high %v875_v17, %v879_v18  ;;  %v867_v54 = vld [vmem:[%s6345_s1 + $0x148] sm:$0xff] }
  0xa3   : > { %v926_v27 = vld [vmem:[%s6345_s1 + $0x320] sm:$0xff]  ;;  %2827 = vmatpush2.bf16.msra.mxu0 %v4228_v30 }
  0xa4   : > { %v1050_v28 = vld [vmem:[%s6345_s1 + $0x700] sm:$0xff]  ;;  %v4221_v32 = vcombine.high %v922_v26, %v926_v27  ;;  %2867 = vmatprep.subr.bf16.mxu1 %v4357_v25  ;;  %v4220_v38 = vcombine.low %v922_v26, %v926_v27  ;;  %v871_v25 = vld [vmem:[%s6345_s1 + $0x168] sm:$0xff]  ;;  %v4174_v27 = vcombine.low %v875_v17, %v879_v18 }
  0xa5   : > { %v1054_v29 = vld [vmem:[%s6345_s1 + $0x720] sm:$0xff]  ;;  %2868 = vmatpush2.bf16.msra.mxu1 %v4356_v31 }
  0xa6   : > { %v4349_v33 = vcombine.high %v1050_v28, %v1054_v29  ;;  %v914_v34 = vld [vmem:[%s6345_s1 + $0x2c0] sm:$0xff]  ;;  %2828 = vmatprep.subr.bf16.mxu0 %v4221_v32  ;;  %v4348_v39 = vcombine.low %v1050_v28, %v1054_v29  ;;  %v4167_v29 = vcombine.high %v867_v54, %v871_v25  ;;  %v4805_v32 = vmov 0  }
  0xa7   : > { %v918_v35 = vld [vmem:[%s6345_s1 + $0x2e0] sm:$0xff]  ;;  %2829 = vmatpush2.bf16.msra.mxu0 %v4220_v38 }
  0xa8   : > { %v1042_v36 = vld [vmem:[%s6345_s1 + $0x6c0] sm:$0xff]  ;;  %v4213_v40 = vcombine.high %v914_v34, %v918_v35  ;;  %2869 = vmatprep.subr.bf16.mxu1 %v4349_v33  ;;  %v4212_v46 = vcombine.low %v914_v34, %v918_v35  ;;  %v859_v33 = vld [vmem:[%s6345_s1 + $0x108] sm:$0xff] }
  0xa9   : > { %v1046_v37 = vld [vmem:[%s6345_s1 + $0x6e0] sm:$0xff]  ;;  %2870 = vmatpush2.bf16.msra.mxu1 %v4348_v39  ;;  %v863_v34 = vld [vmem:[%s6345_s1 + $0x128] sm:$0xff] }
  0xaa   : > { %v4341_v41 = vcombine.high %v1042_v36, %v1046_v37  ;;  %v906_v42 = vld [vmem:[%s6345_s1 + $0x280] sm:$0xff]  ;;  %2830 = vmatprep.subr.bf16.mxu0 %v4213_v40  ;;  %v4340_v47 = vcombine.low %v1042_v36, %v1046_v37  ;;  %v4166_v36 = vcombine.low %v867_v54, %v871_v25  ;;  %v4159_v38 = vcombine.high %v859_v33, %v863_v34 }
  0xab   : > { %v910_v43 = vld [vmem:[%s6345_s1 + $0x2a0] sm:$0xff]  ;;  %2831 = vmatpush2.bf16.msra.mxu0 %v4212_v46 }
  0xac   : > { %v1034_v44 = vld [vmem:[%s6345_s1 + $0x680] sm:$0xff]  ;;  %v4205_v48 = vcombine.high %v906_v42, %v910_v43  ;;  %2871 = vmatprep.subr.bf16.mxu1 %v4341_v41  ;;  %v4204_v56 = vcombine.low %v906_v42, %v910_v43  ;;  %v851_v41 = vld [vmem:[%s6345_s1 + $0xc8] sm:$0xff] }
  0xad   : > { %v1038_v45 = vld [vmem:[%s6345_s1 + $0x6a0] sm:$0xff]  ;;  %2872 = vmatpush2.bf16.msra.mxu1 %v4340_v47  ;;  %v855_v42 = vld [vmem:[%s6345_s1 + $0xe8] sm:$0xff] }
  0xae   : > { %v4333_v49 = vcombine.high %v1034_v44, %v1038_v45  ;;  %v898_v50 = vld [vmem:[%s6345_s1 + $0x240] sm:$0xff]  ;;  %2832 = vmatprep.subr.bf16.mxu0 %v4205_v48  ;;  %v4332_v57 = vcombine.low %v1034_v44, %v1038_v45  ;;  %v4158_v44 = vcombine.low %v859_v33, %v863_v34  ;;  %v4151_v46 = vcombine.high %v851_v41, %v855_v42 }
  0xaf   : > { %v902_v51 = vld [vmem:[%s6345_s1 + $0x260] sm:$0xff]  ;;  %2833 = vmatpush2.bf16.msra.mxu0 %v4204_v56 }
  0xb0   : > { %v1026_v52 = vld [vmem:[%s6345_s1 + $0x640] sm:$0xff]  ;;  %v4197_v60 = vcombine.high %v898_v50, %v902_v51  ;;  %2873 = vmatprep.subr.bf16.mxu1 %v4333_v49  ;;  %v4196_v2 = vcombine.low %v898_v50, %v902_v51  ;;  %v843_v49 = vld [vmem:[%s6345_s1 + $0x88] sm:$0xff] }
  0xb1   : > { %v1030_v55 = vld [vmem:[%s6345_s1 + $0x660] sm:$0xff]  ;;  %2874 = vmatpush2.bf16.msra.mxu1 %v4332_v57  ;;  %v847_v50 = vld [vmem:[%s6345_s1 + $0xa8] sm:$0xff] }
  0xb2   : > { %v4325_v61 = vcombine.high %v1026_v52, %v1030_v55  ;;  %v890_v62 = vld [vmem:[%s6345_s1 + $0x200] sm:$0xff]  ;;  %2834 = vmatprep.subr.bf16.mxu0 %v4197_v60  ;;  %v4324_v3 = vcombine.low %v1026_v52, %v1030_v55  ;;  %v4150_v52 = vcombine.low %v851_v41, %v855_v42  ;;  %v4143_v56 = vcombine.high %v843_v49, %v847_v50 }
  0xb3   : > { %v894_v63 = vld [vmem:[%s6345_s1 + $0x220] sm:$0xff]  ;;  %2835 = vmatpush2.bf16.msra.mxu0 %v4196_v2 }
  0xb4   : > { %v1018_v0 = vld [vmem:[%s6345_s1 + $0x600] sm:$0xff]  ;;  %v4189_v4 = vcombine.high %v890_v62, %v894_v63  ;;  %2875 = vmatprep.subr.bf16.mxu1 %v4325_v61  ;;  %v4188_v10 = vcombine.low %v890_v62, %v894_v63  ;;  %v835_v61 = vld [vmem:[%s6345_s1 + $0x48] sm:$0xff] }
  0xb5   : > { %v1022_v1 = vld [vmem:[%s6345_s1 + $0x620] sm:$0xff]  ;;  %2876 = vmatpush2.bf16.msra.mxu1 %v4324_v3  ;;  %v839_v62 = vld [vmem:[%s6345_s1 + $0x68] sm:$0xff] }
  0xb6   : > { %v4317_v5 = vcombine.high %v1018_v0, %v1022_v1  ;;  %v1138_v6 = vld [vmem:[%s6345_s1 + $0x9c0] sm:$0xff]  ;;  %2836 = vmatprep.subr.bf16.mxu0 %v4189_v4  ;;  %v4316_v11 = vcombine.low %v1018_v0, %v1022_v1  ;;  %v4142_v0 = vcombine.low %v843_v49, %v847_v50  ;;  %v4135_v2 = vcombine.high %v835_v61, %v839_v62 }
  0xb7   : > { %v1142_v7 = vld [vmem:[%s6345_s1 + $0x9e0] sm:$0xff]  ;;  %2837 = vmatpush2.bf16.msra.mxu0 %v4188_v10  ;;  %v4134_v8 = vcombine.low %v835_v61, %v839_v62 }
  0xb8   : > { %v4437_v12 = vcombine.high %v1138_v6, %v1142_v7  ;;  %2877 = vmatprep.subr.bf16.mxu1 %v4317_v5  ;;  %v1130_v14 = vld [vmem:[%s6345_s1 + $0x980] sm:$0xff]  ;;  %v4436_v20 = vcombine.low %v1138_v6, %v1142_v7  ;;  %v827_v5 = vld [vmem:[%s6345_s1 + $0x8] sm:$0xff] }
  0xb9   : > { %v1134_v15 = vld [vmem:[%s6345_s1 + $0x9a0] sm:$0xff]  ;;  %2878 = vmatpush2.bf16.msra.mxu1 %v4316_v11  ;;  %v831_v6 = vld [vmem:[%s6345_s1 + $0x28] sm:$0xff] }
  0xba   : > { %2888 = vmatprep.subr.bf16.mxu0 %v4437_v12  ;;  %v4429_v22 = vcombine.high %v1130_v14, %v1134_v15  ;;  %2929 = vmatprep.subr.bf16.mxu1 %v4183_v13  ;;  %v1122_v23 = vld [vmem:[%s6345_s1 + $0x940] sm:$0xff]  ;;  %v4428_v26 = vcombine.low %v1130_v14, %v1134_v15  ;;  %v4127_v10 = vcombine.high %v827_v5, %v831_v6  ;;  %v1011_v11 = vld [vmem:[%s6345_s1 + $0x5c8] sm:$0xff] }
  0xbb   : > { %v1126_v24 = vld [vmem:[%s6345_s1 + $0x960] sm:$0xff]  ;;  %2839 = vmatmul.mubr.bf16.vlgmr.msra.gmra.mxu0 %v5391_v16  ;;  %v1015_v12 = vld [vmem:[%s6345_s1 + $0x5e8] sm:$0xff]  ;;  %v4126_v17 = vcombine.low %v827_v5, %v831_v6 }
  0xbc   : > { %2880 = vmatmul.mubr.bf16.vlgmr.msra.gmra.mxu1 %v5401_v19  ;;  %2889 = vmatpush1.bf16.msra.mxu0 %v4436_v20  ;;  %v4421_v28 = vcombine.high %v1122_v23, %v1126_v24  ;;  %v1114_v30 = vld [vmem:[%s6345_s1 + $0x900] sm:$0xff]  ;;  %v4420_v35 = vcombine.low %v1122_v23, %v1126_v24  ;;  %v947_v13 = vld [vmem:[%s6345_s1 + $0x3c8] sm:$0xff]  ;;  %v4311_v18 = vcombine.high %v1011_v11, %v1015_v12 }
  0xbd   : > { %2930 = vmatpush1.bf16.msra.mxu1 %v4182_v21  ;;  %2890 = vmatprep.subr.bf16.mxu0 %v4429_v22  ;;  %v1118_v31 = vld [vmem:[%s6345_s1 + $0x920] sm:$0xff]  ;;  %v951_v14 = vld [vmem:[%s6345_s1 + $0x3e8] sm:$0xff]  ;;  %v4310_v54 = vcombine.low %v1011_v11, %v1015_v12 }
  0xbe   : > { %2931 = vmatprep.subr.bf16.mxu1 %v4175_v53  ;;  %2920 = vmatprep.mubr.bf16.mxu0 %v4805_v32  ;;  %v4413_v37 = vcombine.high %v1114_v30, %v1118_v31  ;;  %v1106_v39 = vld [vmem:[%s6345_s1 + $0x8c0] sm:$0xff]  ;;  %v4412_v43 = vcombine.low %v1114_v30, %v1118_v31  ;;  %v4247_v20 = vcombine.high %v947_v13, %v951_v14  ;;  %v1003_v21 = vld [vmem:[%s6345_s1 + $0x588] sm:$0xff]  ;;  %v5500_v53 = vld [vmem:[%s6344_s0 + $0x10] ss:$0 sps:$4 sm:$0xff]  }
  0xbf   : > { %2961 = vmatprep.mubr.bf16.mxu1 %v5261_v58  ;;  %v1110_v40 = vld [vmem:[%s6345_s1 + $0x8e0] sm:$0xff]  ;;  %v1007_v22 = vld [vmem:[%s6345_s1 + $0x5a8] sm:$0xff]  ;;  %v4246_v25 = vcombine.low %v947_v13, %v951_v14 }
  0xc0   : > { %2891 = vmatpush1.bf16.msra.mxu0 %v4428_v26  ;;  %v4405_v45 = vcombine.high %v1106_v39, %v1110_v40  ;;  %v1098_v47 = vld [vmem:[%s6345_s1 + $0x880] sm:$0xff]  ;;  %v4404_v51 = vcombine.low %v1106_v39, %v1110_v40  ;;  %v939_v23 = vld [vmem:[%s6345_s1 + $0x388] sm:$0xff]  ;;  %v4303_v26 = vcombine.high %v1003_v21, %v1007_v22  ;;  %v4302_v33 = vcombine.low %v1003_v21, %v1007_v22 }
  0xc1   : > { %2932 = vmatpush1.bf16.msra.mxu1 %v4174_v27  ;;  %2892 = vmatprep.subr.bf16.mxu0 %v4421_v28  ;;  %v1102_v48 = vld [vmem:[%s6345_s1 + $0x8a0] sm:$0xff]  ;;  %v943_v24 = vld [vmem:[%s6345_s1 + $0x3a8] sm:$0xff] }
  0xc2   : > { %2933 = vmatprep.subr.bf16.mxu1 %v4167_v29  ;;  %v4397_v55 = vcombine.high %v1098_v47, %v1102_v48  ;;  %v1090_v57 = vld [vmem:[%s6345_s1 + $0x840] sm:$0xff]  ;;  %v4396_v63 = vcombine.low %v1098_v47, %v1102_v48  ;;  %v4239_v27 = vcombine.high %v939_v23, %v943_v24  ;;  %v995_v28 = vld [vmem:[%s6345_s1 + $0x548] sm:$0xff]  ;;  %v4238_v34 = vcombine.low %v939_v23, %v943_v24 }
  0xc3   : > { %v1094_v60 = vld [vmem:[%s6345_s1 + $0x860] sm:$0xff]  ;;  %v999_v29 = vld [vmem:[%s6345_s1 + $0x568] sm:$0xff] }
  0xc4   : > { %2893 = vmatpush1.bf16.msra.mxu0 %v4420_v35  ;;  %v4389_v1 = vcombine.high %v1090_v57, %v1094_v60  ;;  %v1082_v3 = vld [vmem:[%s6345_s1 + $0x800] sm:$0xff]  ;;  %v4388_v7 = vcombine.low %v1090_v57, %v1094_v60  ;;  %v931_v30 = vld [vmem:[%s6345_s1 + $0x348] sm:$0xff]  ;;  %v4295_v35 = vcombine.high %v995_v28, %v999_v29  ;;  %v4294_v41 = vcombine.low %v995_v28, %v999_v29 }
  0xc5   : > { %2934 = vmatpush1.bf16.msra.mxu1 %v4166_v36  ;;  %2894 = vmatprep.subr.bf16.mxu0 %v4413_v37  ;;  %v1086_v4 = vld [vmem:[%s6345_s1 + $0x820] sm:$0xff]  ;;  %v935_v31 = vld [vmem:[%s6345_s1 + $0x368] sm:$0xff] }
  0xc6   : > { %2935 = vmatprep.subr.bf16.mxu1 %v4159_v38  ;;  %v4381_v9 = vcombine.high %v1082_v3, %v1086_v4  ;;  %v4380_v15 = vcombine.low %v1082_v3, %v1086_v4  ;;  %v4231_v36 = vcombine.high %v931_v30, %v935_v31  ;;  %v987_v37 = vld [vmem:[%s6345_s1 + $0x508] sm:$0xff]  ;;  %v4230_v42 = vcombine.low %v931_v30, %v935_v31 }
  0xc7   : > { %v991_v38 = vld [vmem:[%s6345_s1 + $0x528] sm:$0xff] }
  0xc8   : > { %2895 = vmatpush1.bf16.msra.mxu0 %v4412_v43  ;;  %v923_v39 = vld [vmem:[%s6345_s1 + $0x308] sm:$0xff]  ;;  %v4287_v43 = vcombine.high %v987_v37, %v991_v38  ;;  %v4286_v49 = vcombine.low %v987_v37, %v991_v38 }
  0xc9   : > { %2936 = vmatpush1.bf16.msra.mxu1 %v4158_v44  ;;  %2896 = vmatprep.subr.bf16.mxu0 %v4405_v45  ;;  %v927_v40 = vld [vmem:[%s6345_s1 + $0x328] sm:$0xff] }
  0xca   : > { %2937 = vmatprep.subr.bf16.mxu1 %v4151_v46  ;;  %v4223_v44 = vcombine.high %v923_v39, %v927_v40  ;;  %v979_v45 = vld [vmem:[%s6345_s1 + $0x4c8] sm:$0xff]  ;;  %v4222_v50 = vcombine.low %v923_v39, %v927_v40 }
  0xcb   : > { %v983_v46 = vld [vmem:[%s6345_s1 + $0x4e8] sm:$0xff] }
  0xcc   : > { %2897 = vmatpush1.bf16.msra.mxu0 %v4404_v51  ;;  %v915_v47 = vld [vmem:[%s6345_s1 + $0x2c8] sm:$0xff]  ;;  %v4279_v51 = vcombine.high %v979_v45, %v983_v46  ;;  %v4278_v61 = vcombine.low %v979_v45, %v983_v46 }
  0xcd   : > { %2938 = vmatpush1.bf16.msra.mxu1 %v4150_v52  ;;  %2898 = vmatprep.subr.bf16.mxu0 %v4397_v55  ;;  %v919_v48 = vld [vmem:[%s6345_s1 + $0x2e8] sm:$0xff] }
  0xce   : > { %2939 = vmatprep.subr.bf16.mxu1 %v4143_v56  ;;  %v4215_v52 = vcombine.high %v915_v47, %v919_v48  ;;  %v971_v55 = vld [vmem:[%s6345_s1 + $0x488] sm:$0xff]  ;;  %v4214_v62 = vcombine.low %v915_v47, %v919_v48 }
  0xcf   : > { %v975_v56 = vld [vmem:[%s6345_s1 + $0x4a8] sm:$0xff] }
  0xd0   : > { %2899 = vmatpush1.bf16.msra.mxu0 %v4396_v63  ;;  %v907_v57 = vld [vmem:[%s6345_s1 + $0x288] sm:$0xff]  ;;  %v4271_v63 = vcombine.high %v971_v55, %v975_v56  ;;  %v4270_v5 = vcombine.low %v971_v55, %v975_v56 }
  0xd1   : > { %2940 = vmatpush1.bf16.msra.mxu1 %v4142_v0  ;;  %2900 = vmatprep.subr.bf16.mxu0 %v4389_v1  ;;  %v911_v60 = vld [vmem:[%s6345_s1 + $0x2a8] sm:$0xff] }
  0xd2   : > { %2941 = vmatprep.subr.bf16.mxu1 %v4135_v2  ;;  %v4207_v0 = vcombine.high %v907_v57, %v911_v60  ;;  %v963_v1 = vld [vmem:[%s6345_s1 + $0x448] sm:$0xff]  ;;  %v4206_v6 = vcombine.low %v907_v57, %v911_v60 }
  0xd3   : > { %v967_v2 = vld [vmem:[%s6345_s1 + $0x468] sm:$0xff] }
  0xd4   : > { %2901 = vmatpush1.bf16.msra.mxu0 %v4388_v7  ;;  %v899_v3 = vld [vmem:[%s6345_s1 + $0x248] sm:$0xff]  ;;  %v4263_v7 = vcombine.high %v963_v1, %v967_v2  ;;  %v4262_v13 = vcombine.low %v963_v1, %v967_v2 }
  0xd5   : > { %2942 = vmatpush1.bf16.msra.mxu1 %v4134_v8  ;;  %2902 = vmatprep.subr.bf16.mxu0 %v4381_v9  ;;  %v903_v4 = vld [vmem:[%s6345_s1 + $0x268] sm:$0xff] }
  0xd6   : > { %2943 = vmatprep.subr.bf16.mxu1 %v4127_v10  ;;  %v4199_v8 = vcombine.high %v899_v3, %v903_v4  ;;  %v955_v9 = vld [vmem:[%s6345_s1 + $0x408] sm:$0xff]  ;;  %v4198_v14 = vcombine.low %v899_v3, %v903_v4 }
  0xd7   : > { %v959_v10 = vld [vmem:[%s6345_s1 + $0x428] sm:$0xff] }
  0xd8   : > { %2903 = vmatpush1.bf16.msra.mxu0 %v4380_v15  ;;  %v891_v11 = vld [vmem:[%s6345_s1 + $0x208] sm:$0xff]  ;;  %v4255_v15 = vcombine.high %v955_v9, %v959_v10  ;;  %v4254_v23 = vcombine.low %v955_v9, %v959_v10 }
  0xd9   : > { %2944 = vmatpush1.bf16.msra.mxu1 %v4126_v17  ;;  %2970 = vmatprep.subr.bf16.mxu0 %v4311_v18  ;;  %v895_v12 = vld [vmem:[%s6345_s1 + $0x228] sm:$0xff] }
  0xda   : > { %2945 = vmatprep.subr.bf16.mxu1 %v4247_v20  ;;  %v4191_v17 = vcombine.high %v891_v11, %v895_v12  ;;  %v1075_v18 = vld [vmem:[%s6345_s1 + $0x7c8] sm:$0xff]  ;;  %v4190_v24 = vcombine.low %v891_v11, %v895_v12 }
  0xdb   : > { %2921 = vmatmul.mubr.bf16.vlgmr.msra.gmra.mxu0 %v5500_v53  ;;  %v1079_v20 = vld [vmem:[%s6345_s1 + $0x7e8] sm:$0xff] }
  0xdc   : > { %2971 = vmatpush1.bf16.msra.mxu0 %v4310_v54  ;;  %3002 = vmatprep.mubr.bf16.mxu0 %v5265_v59  ;;  %v1139_v21 = vld [vmem:[%s6345_s1 + $0x9c8] sm:$0xff]  ;;  %v4375_v54 = vcombine.high %v1075_v18, %v1079_v20  ;;  %v4374_v30 = vcombine.low %v1075_v18, %v1079_v20 }
  0xdd   : > { %2946 = vmatpush2.bf16.msra.mxu1 %v4246_v25  ;;  %2972 = vmatprep.subr.bf16.mxu0 %v4303_v26  ;;  %v1143_v22 = vld [vmem:[%s6345_s1 + $0x9e8] sm:$0xff] }
  0xde   : > { %2947 = vmatprep.subr.bf16.mxu1 %v4239_v27  ;;  %v4439_v25 = vcombine.high %v1139_v21, %v1143_v22  ;;  %v1067_v26 = vld [vmem:[%s6345_s1 + $0x788] sm:$0xff]  ;;  %v4438_v31 = vcombine.low %v1139_v21, %v1143_v22 }
  0xdf   : > { %v1071_v27 = vld [vmem:[%s6345_s1 + $0x7a8] sm:$0xff] }
  0xe0   : > { %2973 = vmatpush1.bf16.msra.mxu0 %v4302_v33  ;;  %v1131_v28 = vld [vmem:[%s6345_s1 + $0x988] sm:$0xff]  ;;  %v4367_v33 = vcombine.high %v1067_v26, %v1071_v27  ;;  %v4366_v39 = vcombine.low %v1067_v26, %v1071_v27  ;;  %v1012_v26 = vld [vmem:[%s6345_s1 + $0x5d0] sm:$0xff] }
  0xe1   : > { %2948 = vmatpush2.bf16.msra.mxu1 %v4238_v34  ;;  %2974 = vmatprep.subr.bf16.mxu0 %v4295_v35  ;;  %v1135_v29 = vld [vmem:[%s6345_s1 + $0x9a8] sm:$0xff]  ;;  %v1016_v27 = vld [vmem:[%s6345_s1 + $0x5f0] sm:$0xff] }
  0xe2   : > { %2949 = vmatprep.subr.bf16.mxu1 %v4231_v36  ;;  %v4431_v34 = vcombine.high %v1131_v28, %v1135_v29  ;;  %v1059_v35 = vld [vmem:[%s6345_s1 + $0x748] sm:$0xff]  ;;  %v4430_v40 = vcombine.low %v1131_v28, %v1135_v29 }
  0xe3   : > { %v1063_v36 = vld [vmem:[%s6345_s1 + $0x768] sm:$0xff] }
  0xe4   : > { %2975 = vmatpush1.bf16.msra.mxu0 %v4294_v41  ;;  %v1123_v37 = vld [vmem:[%s6345_s1 + $0x948] sm:$0xff]  ;;  %v4359_v41 = vcombine.high %v1059_v35, %v1063_v36  ;;  %v4358_v47 = vcombine.low %v1059_v35, %v1063_v36  ;;  %v1004_v35 = vld [vmem:[%s6345_s1 + $0x590] sm:$0xff] }
  0xe5   : > { %2950 = vmatpush2.bf16.msra.mxu1 %v4230_v42  ;;  %2976 = vmatprep.subr.bf16.mxu0 %v4287_v43  ;;  %v1127_v38 = vld [vmem:[%s6345_s1 + $0x968] sm:$0xff]  ;;  %v1008_v36 = vld [vmem:[%s6345_s1 + $0x5b0] sm:$0xff] }
  0xe6   : > { %2951 = vmatprep.subr.bf16.mxu1 %v4223_v44  ;;  %v4423_v42 = vcombine.high %v1123_v37, %v1127_v38  ;;  %v1051_v43 = vld [vmem:[%s6345_s1 + $0x708] sm:$0xff]  ;;  %v4422_v48 = vcombine.low %v1123_v37, %v1127_v38  ;;  %v4312_v38 = vcombine.low %v1012_v26, %v1016_v27 }
  0xe7   : > { %v1055_v44 = vld [vmem:[%s6345_s1 + $0x728] sm:$0xff] }
  0xe8   : > { %2977 = vmatpush1.bf16.msra.mxu0 %v4286_v49  ;;  %v1115_v45 = vld [vmem:[%s6345_s1 + $0x908] sm:$0xff]  ;;  %v4351_v49 = vcombine.high %v1051_v43, %v1055_v44  ;;  %v4350_v57 = vcombine.low %v1051_v43, %v1055_v44  ;;  %v996_v43 = vld [vmem:[%s6345_s1 + $0x550] sm:$0xff] }
  0xe9   : > { %2952 = vmatpush2.bf16.msra.mxu1 %v4222_v50  ;;  %2978 = vmatprep.subr.bf16.mxu0 %v4279_v51  ;;  %v1119_v46 = vld [vmem:[%s6345_s1 + $0x928] sm:$0xff]  ;;  %v1000_v44 = vld [vmem:[%s6345_s1 + $0x570] sm:$0xff] }
  0xea   : > { %2953 = vmatprep.subr.bf16.mxu1 %v4215_v52  ;;  %v4415_v50 = vcombine.high %v1115_v45, %v1119_v46  ;;  %v1043_v51 = vld [vmem:[%s6345_s1 + $0x6c8] sm:$0xff]  ;;  %v4414_v60 = vcombine.low %v1115_v45, %v1119_v46  ;;  %v4304_v46 = vcombine.low %v1004_v35, %v1008_v36 }
  0xeb   : > { %v1047_v52 = vld [vmem:[%s6345_s1 + $0x6e8] sm:$0xff] }
  0xec   : > { %2979 = vmatpush1.bf16.msra.mxu0 %v4278_v61  ;;  %v1107_v55 = vld [vmem:[%s6345_s1 + $0x8c8] sm:$0xff]  ;;  %v4343_v61 = vcombine.high %v1043_v51, %v1047_v52  ;;  %v4342_v3 = vcombine.low %v1043_v51, %v1047_v52  ;;  %v992_v51 = vld [vmem:[%s6345_s1 + $0x530] sm:$0xff] }
  0xed   : > { %2954 = vmatpush2.bf16.msra.mxu1 %v4214_v62  ;;  %2980 = vmatprep.subr.bf16.mxu0 %v4271_v63  ;;  %v1111_v56 = vld [vmem:[%s6345_s1 + $0x8e8] sm:$0xff] }
  0xee   : > { %2955 = vmatprep.subr.bf16.mxu1 %v4207_v0  ;;  %v4407_v62 = vcombine.high %v1107_v55, %v1111_v56  ;;  %v1035_v63 = vld [vmem:[%s6345_s1 + $0x688] sm:$0xff]  ;;  %v4406_v4 = vcombine.low %v1107_v55, %v1111_v56  ;;  %v4296_v55 = vcombine.low %v996_v43, %v1000_v44 }
  0xef   : > { %v1039_v0 = vld [vmem:[%s6345_s1 + $0x6a8] sm:$0xff] }
  0xf0   : > { %2981 = vmatpush1.bf16.msra.mxu0 %v4270_v5  ;;  %v1099_v1 = vld [vmem:[%s6345_s1 + $0x888] sm:$0xff]  ;;  %v4335_v5 = vcombine.high %v1035_v63, %v1039_v0  ;;  %v4334_v11 = vcombine.low %v1035_v63, %v1039_v0  ;;  %v984_v63 = vld [vmem:[%s6345_s1 + $0x4f0] sm:$0xff] }
  0xf1   : > { %2956 = vmatpush2.bf16.msra.mxu1 %v4206_v6  ;;  %2982 = vmatprep.subr.bf16.mxu0 %v4263_v7  ;;  %v1103_v2 = vld [vmem:[%s6345_s1 + $0x8a8] sm:$0xff] }
  0xf2   : > { %2957 = vmatprep.subr.bf16.mxu1 %v4199_v8  ;;  %v4399_v6 = vcombine.high %v1099_v1, %v1103_v2  ;;  %v1027_v7 = vld [vmem:[%s6345_s1 + $0x648] sm:$0xff]  ;;  %v4398_v12 = vcombine.low %v1099_v1, %v1103_v2 }
  0xf3   : > { %v1031_v8 = vld [vmem:[%s6345_s1 + $0x668] sm:$0xff] }
  0xf4   : > { %2983 = vmatpush1.bf16.msra.mxu0 %v4262_v13  ;;  %v1091_v9 = vld [vmem:[%s6345_s1 + $0x848] sm:$0xff]  ;;  %v4327_v13 = vcombine.high %v1027_v7, %v1031_v8  ;;  %v4326_v21 = vcombine.low %v1027_v7, %v1031_v8  ;;  %v976_v7 = vld [vmem:[%s6345_s1 + $0x4b0] sm:$0xff] }
  0xf5   : > { %2958 = vmatpush2.bf16.msra.mxu1 %v4198_v14  ;;  %2984 = vmatprep.subr.bf16.mxu0 %v4255_v15  ;;  %v1095_v10 = vld [vmem:[%s6345_s1 + $0x868] sm:$0xff] }
  0xf6   : > { %2959 = vmatprep.subr.bf16.mxu1 %v4191_v17  ;;  %v4391_v14 = vcombine.high %v1091_v9, %v1095_v10  ;;  %v1019_v15 = vld [vmem:[%s6345_s1 + $0x608] sm:$0xff]  ;;  %v4390_v22 = vcombine.low %v1091_v9, %v1095_v10 }
  0xf7   : > { %v1023_v17 = vld [vmem:[%s6345_s1 + $0x628] sm:$0xff] }
  0xf8   : > { %2985 = vmatpush1.bf16.msra.mxu0 %v4254_v23  ;;  %v1083_v18 = vld [vmem:[%s6345_s1 + $0x808] sm:$0xff]  ;;  %v4319_v23 = vcombine.high %v1019_v15, %v1023_v17  ;;  %v4318_v28 = vcombine.low %v1019_v15, %v1023_v17  ;;  %v968_v15 = vld [vmem:[%s6345_s1 + $0x470] sm:$0xff] }
  0xf9   : > { %2960 = vmatpush2.bf16.msra.mxu1 %v4190_v24  ;;  %2986 = vmatprep.subr.bf16.mxu0 %v4375_v54  ;;  %v1087_v20 = vld [vmem:[%s6345_s1 + $0x828] sm:$0xff]  ;;  %v884_v54 = vld [vmem:[%s6345_s1 + $0x1d0] sm:$0xff] }
  0xfa   : > { %3011 = vmatprep.subr.bf16.mxu1 %v4439_v25  ;;  %v4383_v24 = vcombine.high %v1083_v18, %v1087_v20  ;;  %v888_v25 = vld [vmem:[%s6345_s1 + $0x1f0] sm:$0xff]  ;;  %v4382_v29 = vcombine.low %v1083_v18, %v1087_v20 }
  0xfb   : > { %v4184_v37 = vcombine.low %v884_v54, %v888_v25 }
  0xfc   : > { %2962 = vmatmul.mubr.bf16.vlgmr.msra.gmra.mxu1 %v5391_v16  ;;  %2987 = vmatpush2.bf16.msra.mxu0 %v4374_v30  ;;  %v4185_v30 = vcombine.high %v884_v54, %v888_v25  ;;  %v960_v54 = vld [vmem:[%s6345_s1 + $0x430] sm:$0xff] }
  0xfd   : > { %3012 = vmatpush1.bf16.msra.mxu1 %v4438_v31  ;;  %2988 = vmatprep.subr.bf16.mxu0 %v4367_v33  ;;  %v4313_v31 = vcombine.high %v1012_v26, %v1016_v27  ;;  %v876_v33 = vld [vmem:[%s6345_s1 + $0x190] sm:$0xff] }
  0xfe   : > { %3013 = vmatprep.subr.bf16.mxu1 %v4431_v34  ;;  %3043 = vmatprep.mubr.bf16.mxu1 %v4805_v32  ;;  %v880_v34 = vld [vmem:[%s6345_s1 + $0x1b0] sm:$0xff] }
  0xff   : > { %v4176_v45 = vcombine.low %v876_v33, %v880_v34 }
 0x100   : > { %2989 = vmatpush2.bf16.msra.mxu0 %v4366_v39  ;;  %v4177_v39 = vcombine.high %v876_v33, %v880_v34  ;;  %v1080_v33 = vld [vmem:[%s6345_s1 + $0x7f0] sm:$0xff] }
 0x101   : > { %3014 = vmatpush1.bf16.msra.mxu1 %v4430_v40  ;;  %2990 = vmatprep.subr.bf16.mxu0 %v4359_v41  ;;  %v4305_v40 = vcombine.high %v1004_v35, %v1008_v36  ;;  %v868_v41 = vld [vmem:[%s6345_s1 + $0x150] sm:$0xff] }
 0x102   : > { %3015 = vmatprep.subr.bf16.mxu1 %v4423_v42  ;;  %v872_v42 = vld [vmem:[%s6345_s1 + $0x170] sm:$0xff] }
 0x103   : > { %v4168_v52 = vcombine.low %v868_v41, %v872_v42 }
 0x104   : > { %2991 = vmatpush2.bf16.msra.mxu0 %v4358_v47  ;;  %v4169_v47 = vcombine.high %v868_v41, %v872_v42  ;;  %v1072_v41 = vld [vmem:[%s6345_s1 + $0x7b0] sm:$0xff] }
 0x105   : > { %3016 = vmatpush1.bf16.msra.mxu1 %v4422_v48  ;;  %2992 = vmatprep.subr.bf16.mxu0 %v4351_v49  ;;  %v4297_v48 = vcombine.high %v996_v43, %v1000_v44  ;;  %v860_v49 = vld [vmem:[%s6345_s1 + $0x110] sm:$0xff] }
 0x106   : > { %3017 = vmatprep.subr.bf16.mxu1 %v4415_v50  ;;  %v864_v50 = vld [vmem:[%s6345_s1 + $0x130] sm:$0xff] }
 0x107   : > { %v4161_v56 = vcombine.high %v860_v49, %v864_v50  ;;  %v4160_v0 = vcombine.low %v860_v49, %v864_v50  ;;  %v1064_v49 = vld [vmem:[%s6345_s1 + $0x770] sm:$0xff] }
 0x108   : > { %2993 = vmatpush2.bf16.msra.mxu0 %v4350_v57 }
 0x109   : > { %3018 = vmatpush1.bf16.msra.mxu1 %v4414_v60  ;;  %2994 = vmatprep.subr.bf16.mxu0 %v4343_v61  ;;  %v852_v60 = vld [vmem:[%s6345_s1 + $0xd0] sm:$0xff] }
 0x10a   : > { %3019 = vmatprep.subr.bf16.mxu1 %v4407_v62  ;;  %v856_v61 = vld [vmem:[%s6345_s1 + $0xf0] sm:$0xff] }
 0x10b   : > { %v980_v62 = vld [vmem:[%s6345_s1 + $0x4d0] sm:$0xff]  ;;  %v4153_v2 = vcombine.high %v852_v60, %v856_v61  ;;  %v4152_v8 = vcombine.low %v852_v60, %v856_v61 }
 0x10c   : > { %2995 = vmatpush2.bf16.msra.mxu0 %v4342_v3  ;;  %v4281_v3 = vcombine.high %v980_v62, %v984_v63  ;;  %v4280_v9 = vcombine.low %v980_v62, %v984_v63  ;;  %v1056_v60 = vld [vmem:[%s6345_s1 + $0x730] sm:$0xff] }
 0x10d   : > { %3020 = vmatpush1.bf16.msra.mxu1 %v4406_v4  ;;  %2996 = vmatprep.subr.bf16.mxu0 %v4335_v5  ;;  %v844_v4 = vld [vmem:[%s6345_s1 + $0x90] sm:$0xff] }
 0x10e   : > { %3021 = vmatprep.subr.bf16.mxu1 %v4399_v6  ;;  %v848_v5 = vld [vmem:[%s6345_s1 + $0xb0] sm:$0xff] }
 0x10f   : > { %v972_v6 = vld [vmem:[%s6345_s1 + $0x490] sm:$0xff]  ;;  %v4145_v10 = vcombine.high %v844_v4, %v848_v5  ;;  %v4144_v17 = vcombine.low %v844_v4, %v848_v5 }
 0x110   : > { %2997 = vmatpush2.bf16.msra.mxu0 %v4334_v11  ;;  %v4273_v11 = vcombine.high %v972_v6, %v976_v7  ;;  %v4272_v18 = vcombine.low %v972_v6, %v976_v7  ;;  %v916_v62 = vld [vmem:[%s6345_s1 + $0x2d0] sm:$0xff] }
 0x111   : > { %3022 = vmatpush1.bf16.msra.mxu1 %v4398_v12  ;;  %2998 = vmatprep.subr.bf16.mxu0 %v4327_v13  ;;  %v836_v12 = vld [vmem:[%s6345_s1 + $0x50] sm:$0xff] }
 0x112   : > { %3023 = vmatprep.subr.bf16.mxu1 %v4391_v14  ;;  %v840_v13 = vld [vmem:[%s6345_s1 + $0x70] sm:$0xff] }
 0x113   : > { %v964_v14 = vld [vmem:[%s6345_s1 + $0x450] sm:$0xff]  ;;  %v4137_v20 = vcombine.high %v836_v12, %v840_v13  ;;  %v4136_v25 = vcombine.low %v836_v12, %v840_v13 }
 0x114   : > { %2999 = vmatpush2.bf16.msra.mxu0 %v4326_v21  ;;  %v4265_v21 = vcombine.high %v964_v14, %v968_v15  ;;  %v4264_v26 = vcombine.low %v964_v14, %v968_v15  ;;  %v920_v63 = vld [vmem:[%s6345_s1 + $0x2f0] sm:$0xff] }
 0x115   : > { %3024 = vmatpush1.bf16.msra.mxu1 %v4390_v22  ;;  %3000 = vmatprep.subr.bf16.mxu0 %v4319_v23  ;;  %v828_v22 = vld [vmem:[%s6345_s1 + $0x10] sm:$0xff]  ;;  %v4216_v13 = vcombine.low %v916_v62, %v920_v63 }
 0x116   : > { %3025 = vmatprep.subr.bf16.mxu1 %v4383_v24  ;;  %v832_v23 = vld [vmem:[%s6345_s1 + $0x30] sm:$0xff] }
 0x117   : > { %v956_v24 = vld [vmem:[%s6345_s1 + $0x410] sm:$0xff]  ;;  %v4129_v27 = vcombine.high %v828_v22, %v832_v23  ;;  %v4128_v34 = vcombine.low %v828_v22, %v832_v23 }
 0x118   : > { %3001 = vmatpush2.bf16.msra.mxu0 %v4318_v28  ;;  %v4257_v28 = vcombine.high %v956_v24, %v960_v54  ;;  %v4256_v35 = vcombine.low %v956_v24, %v960_v54  ;;  %v1048_v4 = vld [vmem:[%s6345_s1 + $0x6f0] sm:$0xff] }
 0x119   : > { %3026 = vmatpush1.bf16.msra.mxu1 %v4382_v29  ;;  %3052 = vmatprep.subr.bf16.mxu0 %v4185_v30  ;;  %v948_v29 = vld [vmem:[%s6345_s1 + $0x3d0] sm:$0xff] }
 0x11a   : > { %3093 = vmatprep.subr.bf16.mxu1 %v4313_v31  ;;  %v952_v30 = vld [vmem:[%s6345_s1 + $0x3f0] sm:$0xff] }
 0x11b   : > { %3003 = vmatmul.mubr.bf16.vlgmr.msra.gmra.mxu0 %v5401_v19  ;;  %v1076_v31 = vld [vmem:[%s6345_s1 + $0x7d0] sm:$0xff]  ;;  %v4249_v36 = vcombine.high %v948_v29, %v952_v30  ;;  %v4248_v42 = vcombine.low %v948_v29, %v952_v30 }
 0x11c   : > { %3044 = vmatmul.mubr.bf16.vlgmr.msra.gmra.mxu1 %v5500_v53  ;;  %3053 = vmatpush1.bf16.msra.mxu0 %v4184_v37  ;;  %v988_v53 = vld [vmem:[%s6345_s1 + $0x510] sm:$0xff]  ;;  %v4377_v37 = vcombine.high %v1076_v31, %v1080_v33  ;;  %v4376_v43 = vcombine.low %v1076_v31, %v1080_v33 }
 0x11d   : > { %3094 = vmatpush1.bf16.msra.mxu1 %v4312_v38  ;;  %3054 = vmatprep.subr.bf16.mxu0 %v4177_v39  ;;  %v4289_v57 = vcombine.high %v988_v53, %v992_v51  ;;  %v4288_v1 = vcombine.low %v988_v53, %v992_v51  ;;  %v940_v38 = vld [vmem:[%s6345_s1 + $0x390] sm:$0xff] }
 0x11e   : > { %3095 = vmatprep.subr.bf16.mxu1 %v4305_v40  ;;  %3084 = vmatprep.mubr.bf16.mxu0 %v5261_v58  ;;  %v944_v39 = vld [vmem:[%s6345_s1 + $0x3b0] sm:$0xff] }
 0x11f   : > { %3125 = vmatprep.mubr.bf16.mxu1 %v5265_v59  ;;  %v1068_v40 = vld [vmem:[%s6345_s1 + $0x790] sm:$0xff]  ;;  %v4241_v44 = vcombine.high %v940_v38, %v944_v39  ;;  %v4240_v50 = vcombine.low %v940_v38, %v944_v39  ;;  %v889_v38 = vld [vmem:[%s6345_s1 + $0x1f8] sm:$0xff] }
 0x120   : > { %3055 = vmatpush1.bf16.msra.mxu0 %v4176_v45  ;;  %v932_v45 = vld [vmem:[%s6345_s1 + $0x350] sm:$0xff] }
 0x121   : > { %3096 = vmatpush1.bf16.msra.mxu1 %v4304_v46  ;;  %3056 = vmatprep.subr.bf16.mxu0 %v4169_v47  ;;  %v936_v46 = vld [vmem:[%s6345_s1 + $0x370] sm:$0xff]  ;;  %v4369_v47 = vcombine.high %v1068_v40, %v1072_v41 }
 0x122   : > { %3097 = vmatprep.subr.bf16.mxu1 %v4297_v48  ;;  %v1060_v48 = vld [vmem:[%s6345_s1 + $0x750] sm:$0xff]  ;;  %v4232_v61 = vcombine.low %v932_v45, %v936_v46 }
 0x123   : > { %v924_v53 = vld [vmem:[%s6345_s1 + $0x310] sm:$0xff] }
 0x124   : > { %3057 = vmatpush1.bf16.msra.mxu0 %v4168_v52  ;;  %v928_v51 = vld [vmem:[%s6345_s1 + $0x330] sm:$0xff]  ;;  %v4368_v52 = vcombine.low %v1068_v40, %v1072_v41 }
 0x125   : > { %3098 = vmatpush1.bf16.msra.mxu1 %v4296_v55  ;;  %3058 = vmatprep.subr.bf16.mxu0 %v4161_v56  ;;  %v4233_v55 = vcombine.high %v932_v45, %v936_v46  ;;  %v4361_v56 = vcombine.high %v1060_v48, %v1064_v49  ;;  %v4224_v5 = vcombine.low %v924_v53, %v928_v51  ;;  %v908_v6 = vld [vmem:[%s6345_s1 + $0x290] sm:$0xff]  ;;  %v881_v46 = vld [vmem:[%s6345_s1 + $0x1b8] sm:$0xff] }
 0x126   : > { %3099 = vmatprep.subr.bf16.mxu1 %v4289_v57  ;;  %v1052_v57 = vld [vmem:[%s6345_s1 + $0x710] sm:$0xff] }
 0x127   : > { %v4352_v7 = vcombine.low %v1052_v57, %v1056_v60  ;;  %v1040_v12 = vld [vmem:[%s6345_s1 + $0x6b0] sm:$0xff] }
 0x128   : > { %3059 = vmatpush1.bf16.msra.mxu0 %v4160_v0  ;;  %v4360_v0 = vcombine.low %v1060_v48, %v1064_v49  ;;  %v900_v14 = vld [vmem:[%s6345_s1 + $0x250] sm:$0xff] }
 0x129   : > { %3100 = vmatpush1.bf16.msra.mxu1 %v4288_v1  ;;  %3060 = vmatprep.subr.bf16.mxu0 %v4153_v2  ;;  %v4225_v1 = vcombine.high %v924_v53, %v928_v51  ;;  %v4353_v2 = vcombine.high %v1052_v57, %v1056_v60  ;;  %v1032_v22 = vld [vmem:[%s6345_s1 + $0x670] sm:$0xff] }
 0x12a   : > { %3101 = vmatprep.subr.bf16.mxu1 %v4281_v3  ;;  %v1044_v3 = vld [vmem:[%s6345_s1 + $0x6d0] sm:$0xff] }
 0x12b   : > { %v4344_v15 = vcombine.low %v1044_v3, %v1048_v4  ;;  %v892_v24 = vld [vmem:[%s6345_s1 + $0x210] sm:$0xff] }
 0x12c   : > { %3061 = vmatpush1.bf16.msra.mxu0 %v4152_v8  ;;  %v4217_v8 = vcombine.high %v916_v62, %v920_v63  ;;  %v1024_v29 = vld [vmem:[%s6345_s1 + $0x630] sm:$0xff] }
 0x12d   : > { %3102 = vmatpush1.bf16.msra.mxu1 %v4280_v9  ;;  %3062 = vmatprep.subr.bf16.mxu0 %v4145_v10  ;;  %v912_v9 = vld [vmem:[%s6345_s1 + $0x2b0] sm:$0xff] }
 0x12e   : > { %3103 = vmatprep.subr.bf16.mxu1 %v4273_v11  ;;  %v1036_v10 = vld [vmem:[%s6345_s1 + $0x690] sm:$0xff]  ;;  %v4345_v11 = vcombine.high %v1044_v3, %v1048_v4  ;;  %v4208_v23 = vcombine.low %v908_v6, %v912_v9 }
 0x12f   : > { %v4336_v54 = vcombine.low %v1036_v10, %v1040_v12  ;;  %v1140_v31 = vld [vmem:[%s6345_s1 + $0x9d0] sm:$0xff] }
 0x130   : > { %3063 = vmatpush1.bf16.msra.mxu0 %v4144_v17  ;;  %v4209_v17 = vcombine.high %v908_v6, %v912_v9  ;;  %v1132_v40 = vld [vmem:[%s6345_s1 + $0x990] sm:$0xff] }
 0x131   : > { %3104 = vmatpush1.bf16.msra.mxu1 %v4272_v18  ;;  %3064 = vmatprep.subr.bf16.mxu0 %v4137_v20  ;;  %v904_v18 = vld [vmem:[%s6345_s1 + $0x270] sm:$0xff] }
 0x132   : > { %3105 = vmatprep.subr.bf16.mxu1 %v4265_v21  ;;  %v1028_v20 = vld [vmem:[%s6345_s1 + $0x650] sm:$0xff]  ;;  %v4337_v21 = vcombine.high %v1036_v10, %v1040_v12  ;;  %v4200_v30 = vcombine.low %v900_v14, %v904_v18 }
 0x133   : > { %v4328_v33 = vcombine.low %v1028_v20, %v1032_v22  ;;  %v1124_v48 = vld [vmem:[%s6345_s1 + $0x950] sm:$0xff] }
 0x134   : > { %3065 = vmatpush1.bf16.msra.mxu0 %v4136_v25  ;;  %v4201_v25 = vcombine.high %v900_v14, %v904_v18  ;;  %v1128_v49 = vld [vmem:[%s6345_s1 + $0x970] sm:$0xff]  ;;  %v845_v14 = vld [vmem:[%s6345_s1 + $0x98] sm:$0xff] }
 0x135   : > { %3106 = vmatpush1.bf16.msra.mxu1 %v4264_v26  ;;  %3066 = vmatprep.subr.bf16.mxu0 %v4129_v27  ;;  %v896_v26 = vld [vmem:[%s6345_s1 + $0x230] sm:$0xff]  ;;  %v4425_v62 = vcombine.high %v1124_v48, %v1128_v49 }
 0x136   : > { %3107 = vmatprep.subr.bf16.mxu1 %v4257_v28  ;;  %v1020_v27 = vld [vmem:[%s6345_s1 + $0x610] sm:$0xff]  ;;  %v4329_v28 = vcombine.high %v1028_v20, %v1032_v22  ;;  %v4192_v39 = vcombine.low %v892_v24, %v896_v26 }
 0x137   : > { %v4320_v41 = vcombine.low %v1020_v27, %v1024_v29  ;;  %v1116_v57 = vld [vmem:[%s6345_s1 + $0x910] sm:$0xff] }
 0x138   : > { %3067 = vmatpush1.bf16.msra.mxu0 %v4128_v34  ;;  %v4193_v34 = vcombine.high %v892_v24, %v896_v26  ;;  %v1120_v60 = vld [vmem:[%s6345_s1 + $0x930] sm:$0xff]  ;;  %v837_v24 = vld [vmem:[%s6345_s1 + $0x58] sm:$0xff] }
 0x139   : > { %3108 = vmatpush1.bf16.msra.mxu1 %v4256_v35  ;;  %3068 = vmatprep.subr.bf16.mxu0 %v4249_v36  ;;  %v1144_v35 = vld [vmem:[%s6345_s1 + $0x9f0] sm:$0xff]  ;;  %v885_v36 = vld [vmem:[%s6345_s1 + $0x1d8] sm:$0xff]  ;;  %v4417_v6 = vcombine.high %v1116_v57, %v1120_v60  ;;  %v4416_v9 = vcombine.low %v1116_v57, %v1120_v60 }
 0x13a   : > { %3109 = vmatprep.subr.bf16.mxu1 %v4377_v37  ;;  %v4321_v37 = vcombine.high %v1020_v27, %v1024_v29  ;;  %v4187_v45 = vcombine.high %v885_v36, %v889_v38  ;;  %v1108_v3 = vld [vmem:[%s6345_s1 + $0x8d0] sm:$0xff]  ;;  %v1148_v29 = vlaneseq }
 0x13b   : > { %v1112_v4 = vld [vmem:[%s6345_s1 + $0x8f0] sm:$0xff] }
 0x13c   : > { %3069 = vmatpush2.bf16.msra.mxu0 %v4248_v42  ;;  %v4441_v42 = vcombine.high %v1140_v31, %v1144_v35  ;;  %v1100_v10 = vld [vmem:[%s6345_s1 + $0x890] sm:$0xff]  ;;  %v4408_v18 = vcombine.low %v1108_v3, %v1112_v4 }
 0x13d   : > { %3110 = vmatpush2.bf16.msra.mxu1 %v4376_v43  ;;  %3070 = vmatprep.subr.bf16.mxu0 %v4241_v44  ;;  %v1136_v43 = vld [vmem:[%s6345_s1 + $0x9b0] sm:$0xff]  ;;  %v877_v44 = vld [vmem:[%s6345_s1 + $0x198] sm:$0xff] }
 0x13e   : > { %3111 = vmatprep.subr.bf16.mxu1 %v4369_v47  ;;  %v4440_v47 = vcombine.low %v1140_v31, %v1144_v35  ;;  %v4433_v53 = vcombine.high %v1132_v40, %v1136_v43  ;;  %v4179_v51 = vcombine.high %v877_v44, %v881_v46  ;;  %v1092_v20 = vld [vmem:[%s6345_s1 + $0x850] sm:$0xff] }
 0x13f   : > { %v1084_v27 = vld [vmem:[%s6345_s1 + $0x810] sm:$0xff] }
 0x140   : > { %3071 = vmatpush2.bf16.msra.mxu0 %v4240_v50  ;;  %v4186_v50 = vcombine.low %v885_v36, %v889_v38 }
 0x141   : > { %3112 = vmatpush2.bf16.msra.mxu1 %v4368_v52  ;;  %3072 = vmatprep.subr.bf16.mxu0 %v4233_v55  ;;  %v869_v52 = vld [vmem:[%s6345_s1 + $0x158] sm:$0xff] }
 0x142   : > { %3113 = vmatprep.subr.bf16.mxu1 %v4361_v56  ;;  %v873_v55 = vld [vmem:[%s6345_s1 + $0x178] sm:$0xff]  ;;  %v4432_v56 = vcombine.low %v1132_v40, %v1136_v43 }
 0x143   : > { %v4171_v63 = vcombine.high %v869_v52, %v873_v55  ;;  %v949_v43 = vld [vmem:[%s6345_s1 + $0x3d8] sm:$0xff] }
 0x144   : > { %3073 = vmatpush2.bf16.msra.mxu0 %v4232_v61  ;;  %v4178_v61 = vcombine.low %v877_v44, %v881_v46  ;;  %v953_v44 = vld [vmem:[%s6345_s1 + $0x3f8] sm:$0xff] }
 0x145   : > { %3114 = vmatpush2.bf16.msra.mxu1 %v4360_v0  ;;  %3074 = vmatprep.subr.bf16.mxu0 %v4225_v1  ;;  %v861_v0 = vld [vmem:[%s6345_s1 + $0x118] sm:$0xff]  ;;  %v4250_v60 = vcombine.low %v949_v43, %v953_v44 }
 0x146   : > { %3115 = vmatprep.subr.bf16.mxu1 %v4353_v2  ;;  %v865_v1 = vld [vmem:[%s6345_s1 + $0x138] sm:$0xff]  ;;  %v4424_v2 = vcombine.low %v1124_v48, %v1128_v49  ;;  %v6000_v48 = vld [vmem:[%s6346_s2] sm:$0xff] }
 0x147   : > { %v4162_v12 = vcombine.low %v861_v0, %v865_v1 }
 0x148   : > { %3075 = vmatpush2.bf16.msra.mxu0 %v4224_v5  ;;  %v4170_v5 = vcombine.low %v869_v52, %v873_v55  ;;  %v941_v52 = vld [vmem:[%s6345_s1 + $0x398] sm:$0xff] }
 0x149   : > { %3116 = vmatpush2.bf16.msra.mxu1 %v4352_v7  ;;  %3076 = vmatprep.subr.bf16.mxu0 %v4217_v8  ;;  %v4163_v7 = vcombine.high %v861_v0, %v865_v1  ;;  %v857_v8 = vld [vmem:[%s6345_s1 + $0xf8] sm:$0xff] }
 0x14a   : > { %3117 = vmatprep.subr.bf16.mxu1 %v4345_v11  ;;  %v1104_v11 = vld [vmem:[%s6345_s1 + $0x8b0] sm:$0xff]  ;;  %v945_v55 = vld [vmem:[%s6345_s1 + $0x3b8] sm:$0xff] }
 0x14b   : > { %v4400_v26 = vcombine.low %v1100_v10, %v1104_v11  ;;  %v1001_v0 = vld [vmem:[%s6345_s1 + $0x578] sm:$0xff] }
 0x14c   : > { %3077 = vmatpush2.bf16.msra.mxu0 %v4216_v13  ;;  %v4409_v13 = vcombine.high %v1108_v3, %v1112_v4  ;;  %v933_v3 = vld [vmem:[%s6345_s1 + $0x358] sm:$0xff] }
 0x14d   : > { %3118 = vmatpush2.bf16.msra.mxu1 %v4344_v15  ;;  %3078 = vmatprep.subr.bf16.mxu0 %v4209_v17  ;;  %v849_v17 = vld [vmem:[%s6345_s1 + $0xb8] sm:$0xff] }
 0x14e   : > { %3119 = vmatprep.subr.bf16.mxu1 %v4337_v21  ;;  %v1096_v21 = vld [vmem:[%s6345_s1 + $0x870] sm:$0xff]  ;;  %v937_v4 = vld [vmem:[%s6345_s1 + $0x378] sm:$0xff] }
 0x14f   : > { %v4393_v31 = vcombine.high %v1092_v20, %v1096_v21  ;;  %v4392_v36 = vcombine.low %v1092_v20, %v1096_v21 }
 0x150   : > { %3079 = vmatpush2.bf16.msra.mxu0 %v4208_v23  ;;  %v4401_v23 = vcombine.high %v1100_v10, %v1104_v11 }
 0x151   : > { %3120 = vmatpush2.bf16.msra.mxu1 %v4336_v54  ;;  %3080 = vmatprep.subr.bf16.mxu0 %v4201_v25  ;;  %v841_v54 = vld [vmem:[%s6345_s1 + $0x78] sm:$0xff]  ;;  %v4147_v25 = vcombine.high %v845_v14, %v849_v17 }
 0x152   : > { %3121 = vmatprep.subr.bf16.mxu1 %v4329_v28  ;;  %v1088_v28 = vld [vmem:[%s6345_s1 + $0x830] sm:$0xff]  ;;  %v4139_v35 = vcombine.high %v837_v24, %v841_v54  ;;  %v4138_v38 = vcombine.low %v837_v24, %v841_v54 }
 0x154   : > { %3081 = vmatpush2.bf16.msra.mxu0 %v4200_v30  ;;  %v4146_v30 = vcombine.low %v845_v14, %v849_v17  ;;  %v929_v17 = vld [vmem:[%s6345_s1 + $0x338] sm:$0xff] }
 0x155   : > { %3122 = vmatpush2.bf16.msra.mxu1 %v4328_v33  ;;  %3082 = vmatprep.subr.bf16.mxu0 %v4193_v34  ;;  %v829_v33 = vld [vmem:[%s6345_s1 + $0x18] sm:$0xff] }
 0x156   : > { %3123 = vmatprep.subr.bf16.mxu1 %v4321_v37  ;;  %v833_v34 = vld [vmem:[%s6345_s1 + $0x38] sm:$0xff]  ;;  %v5982_v37 = vshrl.u32 %v1148_v29, 7 }
 0x157   : > { %v4131_v40 = vcombine.high %v829_v33, %v833_v34 }
 0x158   : > { %3083 = vmatpush2.bf16.msra.mxu0 %v4192_v39  ;;  %v4385_v39 = vcombine.high %v1084_v27, %v1088_v28  ;;  %v1150_v46 = vsub.s32 0, %v5982_v37 }
 0x159   : > { %3124 = vmatpush2.bf16.msra.mxu1 %v4320_v41  ;;  %3134 = vmatprep.subr.bf16.mxu0 %v4441_v42  ;;  %v1013_v41 = vld [vmem:[%s6345_s1 + $0x5d8] sm:$0xff] }
 0x15a   : > { %3175 = vmatprep.subr.bf16.mxu1 %v4187_v45  ;;  %v1017_v42 = vld [vmem:[%s6345_s1 + $0x5f8] sm:$0xff]  ;;  %v4384_v45 = vcombine.low %v1084_v27, %v1088_v28 }
 0x15b   : > { %3085 = vmatmul.mubr.bf16.vlgmr.msra.gmra.mxu0 %v5391_v16  ;;  %v4315_v49 = vcombine.high %v1013_v41, %v1017_v42  ;;  %v4314_v57 = vcombine.low %v1013_v41, %v1017_v42  ;;  %v917_v27 = vld [vmem:[%s6345_s1 + $0x2d8] sm:$0xff] }
 0x15c   : > { %3126 = vmatmul.mubr.bf16.vlgmr.msra.gmra.mxu1 %v5401_v19  ;;  %3135 = vmatpush1.bf16.msra.mxu0 %v4440_v47  ;;  %v4130_v47 = vcombine.low %v829_v33, %v833_v34  ;;  %v921_v28 = vld [vmem:[%s6345_s1 + $0x2f8] sm:$0xff] }
 0x15d   : > { %3176 = vmatpush1.bf16.msra.mxu1 %v4186_v50  ;;  %3136 = vmatprep.subr.bf16.mxu0 %v4433_v53  ;;  %v4251_v50 = vcombine.high %v949_v43, %v953_v44  ;;  %v1005_v53 = vld [vmem:[%s6345_s1 + $0x598] sm:$0xff]  ;;  %v4219_v33 = vcombine.high %v917_v27, %v921_v28 }
 0x15e   : > { %3177 = vmatprep.subr.bf16.mxu1 %v4179_v51  ;;  %3166 = vmatprep.mubr.bf16.mxu0 %v4805_v32  ;;  %v1009_v51 = vld [vmem:[%s6345_s1 + $0x5b8] sm:$0xff] }
 0x15f   : > { %3207 = vmatprep.mubr.bf16.mxu1 %v5261_v58  ;;  %v853_v58 = vld [vmem:[%s6345_s1 + $0xd8] sm:$0xff] }
 0x160   : > { %3137 = vmatpush1.bf16.msra.mxu0 %v4432_v56  ;;  %v4155_v15 = vcombine.high %v853_v58, %v857_v8  ;;  %v4154_v22 = vcombine.low %v853_v58, %v857_v8  ;;  %v1151_v56 = vrot.slane %v6000_v48, %v1150_v46  ;;  %v4242_v8 = vcombine.low %v941_v52, %v945_v55  ;;  %v973_v34 = vld [vmem:[%s6345_s1 + $0x498] sm:$0xff] }
 0x161   : > { %3178 = vmatpush1.bf16.msra.mxu1 %v4178_v61  ;;  %3138 = vmatprep.subr.bf16.mxu0 %v4425_v62  ;;  %v4307_v61 = vcombine.high %v1005_v53, %v1009_v51  ;;  %v4243_v62 = vcombine.high %v941_v52, %v945_v55  ;;  %v965_v43 = vld [vmem:[%s6345_s1 + $0x458] sm:$0xff] }
 0x162   : > { %3179 = vmatprep.subr.bf16.mxu1 %v4171_v63  ;;  %v997_v63 = vld [vmem:[%s6345_s1 + $0x558] sm:$0xff] }
 0x163   : > { %v4298_v20 = vcombine.low %v997_v63, %v1001_v0  ;;  %v969_v44 = vld [vmem:[%s6345_s1 + $0x478] sm:$0xff] }
 0x164   : > { %3139 = vmatpush1.bf16.msra.mxu0 %v4424_v2  ;;  %v6024_v2 = vld [vmem:[%s6344_s0 + $0x10] ss:$0 sps:$4 sm:$0xff]   ;;  %v905_v46 = vld [vmem:[%s6345_s1 + $0x278] sm:$0xff] }
 0x165   : > { %3180 = vmatpush1.bf16.msra.mxu1 %v4170_v5  ;;  %3140 = vmatprep.subr.bf16.mxu0 %v4417_v6  ;;  %v961_v52 = vld [vmem:[%s6345_s1 + $0x438] sm:$0xff] }
 0x166   : > { %3181 = vmatprep.subr.bf16.mxu1 %v4163_v7  ;;  %v4306_v7 = vcombine.low %v1005_v53, %v1009_v51  ;;  %v957_v51 = vld [vmem:[%s6345_s1 + $0x418] sm:$0xff] }
 0x167   : > { %v893_v55 = vld [vmem:[%s6345_s1 + $0x218] sm:$0xff] }
 0x168   : > { %3141 = vmatpush1.bf16.msra.mxu0 %v4416_v9  ;;  %v4299_v9 = vcombine.high %v997_v63, %v1001_v0  ;;  %v1077_v63 = vld [vmem:[%s6345_s1 + $0x7d8] sm:$0xff] }
 0x169   : > { %3182 = vmatpush1.bf16.msra.mxu1 %v4162_v12  ;;  %3142 = vmatprep.subr.bf16.mxu0 %v4409_v13  ;;  %v4235_v12 = vcombine.high %v933_v3, %v937_v4  ;;  %v989_v13 = vld [vmem:[%s6345_s1 + $0x518] sm:$0xff] }
 0x16a   : > { %3183 = vmatprep.subr.bf16.mxu1 %v4155_v15  ;;  %v925_v15 = vld [vmem:[%s6345_s1 + $0x318] sm:$0xff] }
 0x16b   : > { %v4227_v54 = vcombine.high %v925_v15, %v929_v17  ;;  %v1081_v0 = vld [vmem:[%s6345_s1 + $0x7f8] sm:$0xff] }
 0x16c   : > { %3143 = vmatpush1.bf16.msra.mxu0 %v4408_v18 }
 0x16d   : > { %3184 = vmatpush1.bf16.msra.mxu1 %v4154_v22  ;;  %3144 = vmatprep.subr.bf16.mxu0 %v4401_v23  ;;  %v4234_v22 = vcombine.low %v933_v3, %v937_v4  ;;  %v1145_v3 = vld [vmem:[%s6345_s1 + $0x9f8] sm:$0xff]  ;;  %v4258_v4 = vcombine.low %v957_v51, %v961_v52 }
 0x16e   : > { %3185 = vmatprep.subr.bf16.mxu1 %v4147_v25  ;;  %v981_v25 = vld [vmem:[%s6345_s1 + $0x4d8] sm:$0xff] }
 0x170   : > { %3145 = vmatpush1.bf16.msra.mxu0 %v4400_v26  ;;  %v985_v26 = vld [vmem:[%s6345_s1 + $0x4f8] sm:$0xff] }
 0x171   : > { %3186 = vmatpush1.bf16.msra.mxu1 %v4146_v30  ;;  %3146 = vmatprep.subr.bf16.mxu0 %v4393_v31  ;;  %v4226_v30 = vcombine.low %v925_v15, %v929_v17  ;;  %v4283_v31 = vcombine.high %v981_v25, %v985_v26 }
 0x172   : > { %3187 = vmatprep.subr.bf16.mxu1 %v4139_v35  ;;  %v977_v35 = vld [vmem:[%s6345_s1 + $0x4b8] sm:$0xff] }
 0x173   : > { %v4275_v41 = vcombine.high %v973_v34, %v977_v35 }
 0x174   : > { %3147 = vmatpush1.bf16.msra.mxu0 %v4392_v36  ;;  %v909_v36 = vld [vmem:[%s6345_s1 + $0x298] sm:$0xff] }
 0x175   : > { %3188 = vmatpush1.bf16.msra.mxu1 %v4138_v38  ;;  %3148 = vmatprep.subr.bf16.mxu0 %v4385_v39  ;;  %v913_v38 = vld [vmem:[%s6345_s1 + $0x2b8] sm:$0xff]  ;;  %v4282_v39 = vcombine.low %v981_v25, %v985_v26 }
 0x176   : > { %3189 = vmatprep.subr.bf16.mxu1 %v4131_v40  ;;  %v4218_v40 = vcombine.low %v917_v27, %v921_v28  ;;  %v4211_v42 = vcombine.high %v909_v36, %v913_v38  ;;  %v1053_v28 = vld [vmem:[%s6345_s1 + $0x718] sm:$0xff] }
 0x178   : > { %3149 = vmatpush1.bf16.msra.mxu0 %v4384_v45  ;;  %v901_v45 = vld [vmem:[%s6345_s1 + $0x258] sm:$0xff] }
 0x179   : > { %3190 = vmatpush1.bf16.msra.mxu1 %v4130_v47  ;;  %3216 = vmatprep.subr.bf16.mxu0 %v4315_v49  ;;  %v4274_v47 = vcombine.low %v973_v34, %v977_v35  ;;  %v4210_v49 = vcombine.low %v909_v36, %v913_v38  ;;  %v4203_v53 = vcombine.high %v901_v45, %v905_v46 }
 0x17a   : > { %3191 = vmatprep.subr.bf16.mxu1 %v4251_v50  ;;  %v4267_v50 = vcombine.high %v965_v43, %v969_v44 }
 0x17b   : > { %v2840_v1 = vpop.f32.mrf.mxu0  ;;  %3167 = vmatmul.mubr.bf16.vlgmr.msra.gmra.mxu0 %v6024_v2 }
 0x17c   : > { %v2841_v5 = vadd.f32 %v2840_v1, %v1151_v56  ;;  %v2881_v6 = vpop.f32.mrf.mxu1  ;;  %3217 = vmatpush1.bf16.msra.mxu0 %v4314_v57  ;;  %3248 = vmatprep.mubr.bf16.mxu0 %v5265_v59  ;;  %v993_v59 = vld [vmem:[%s6345_s1 + $0x538] sm:$0xff]  ;;  %v4266_v57 = vcombine.low %v965_v43, %v969_v44  ;;  %v1154_v43 = vsub.s32 1, %v5982_v37 }
 0x17d   : > { %3192 = vmatpush2.bf16.msra.mxu1 %v4250_v60  ;;  %v6034_v58 = vpop.f32.mrf.mxu0  ;;  %3218 = vmatprep.subr.bf16.mxu0 %v4307_v61  ;;  %v4291_v23 = vcombine.high %v989_v13, %v993_v59  ;;  %v4290_v29 = vcombine.low %v989_v13, %v993_v59  ;;  %v897_v56 = vld [vmem:[%s6345_s1 + $0x238] sm:$0xff]  ;;  %v4202_v60 = vcombine.low %v901_v45, %v905_v46 }
 0x17e   : > { %v6036_v10 = vadd.f32 %v2881_v6, %v2841_v5  ;;  %v6038_v11 = vpop.f32.mrf.mxu1  ;;  %3193 = vmatprep.subr.bf16.mxu1 %v4243_v62  ;;  %v4259_v61 = vcombine.high %v957_v51, %v961_v52  ;;  %v4195_v62 = vcombine.high %v893_v55, %v897_v56  ;;  %v1141_v1 = vld [vmem:[%s6345_s1 + $0x9d8] sm:$0xff]  ;;  %v4194_v5 = vcombine.low %v893_v55, %v897_v56 }
 0x17f   : > { %v2844_v14 = vpop.f32.mrf.mxu0  ;;  %v4379_v6 = vcombine.high %v1077_v63, %v1081_v0  ;;  %v1137_v13 = vld [vmem:[%s6345_s1 + $0x9b8] sm:$0xff]  ;;  %v4378_v59 = vcombine.low %v1077_v63, %v1081_v0  ;;  %v1155_v52 = vrot.slane %v6000_v48, %v1154_v43 }
 0x180   : > { %v2885_v18 = vpop.f32.mrf.mxu1  ;;  %3219 = vmatpush1.bf16.msra.mxu0 %v4306_v7  ;;  %v4443_v7 = vcombine.high %v1141_v1, %v1145_v3  ;;  %v4442_v14 = vcombine.low %v1141_v1, %v1145_v3  ;;  %v1097_v63 = vld [vmem:[%s6345_s1 + $0x878] sm:$0xff] }
 0x181   : > { %3194 = vmatpush2.bf16.msra.mxu1 %v4242_v8  ;;  %v2845_v21 = vpop.f32.mrf.mxu0  ;;  %3220 = vmatprep.subr.bf16.mxu0 %v4299_v9  ;;  %v1069_v8 = vld [vmem:[%s6345_s1 + $0x798] sm:$0xff]  ;;  %v2843_v1 = vadd.f32 %v6034_v58, %v1155_v52  ;;  %v1158_v52 = vsub.s32 2, %v5982_v37 }
 0x182   : > { %v2886_v24 = vpop.f32.mrf.mxu1  ;;  %3195 = vmatprep.subr.bf16.mxu1 %v4235_v12  ;;  %v1073_v9 = vld [vmem:[%s6345_s1 + $0x7b8] sm:$0xff] }
 0x183   : > { %v1133_v12 = vld [vmem:[%s6345_s1 + $0x998] sm:$0xff]  ;;  %v4371_v15 = vcombine.high %v1069_v8, %v1073_v9  ;;  %v4370_v24 = vcombine.low %v1069_v8, %v1073_v9 }
 0x184   : > { %3221 = vmatpush1.bf16.msra.mxu0 %v4298_v20  ;;  %v4435_v17 = vcombine.high %v1133_v12, %v1137_v13  ;;  %v1061_v18 = vld [vmem:[%s6345_s1 + $0x758] sm:$0xff]  ;;  %v4434_v25 = vcombine.low %v1133_v12, %v1137_v13  ;;  %v2884_v12 = vadd.f32 %v6038_v11, %v2843_v1 }
 0x185   : > { %3196 = vmatpush2.bf16.msra.mxu1 %v4234_v22  ;;  %3222 = vmatprep.subr.bf16.mxu0 %v4291_v23  ;;  %v1065_v20 = vld [vmem:[%s6345_s1 + $0x778] sm:$0xff] }
 0x186   : > { %3197 = vmatprep.subr.bf16.mxu1 %v4227_v54  ;;  %v1125_v22 = vld [vmem:[%s6345_s1 + $0x958] sm:$0xff]  ;;  %v4363_v26 = vcombine.high %v1061_v18, %v1065_v20 }
 0x187   : > { %v1129_v23 = vld [vmem:[%s6345_s1 + $0x978] sm:$0xff] }
 0x188   : > { %3223 = vmatpush1.bf16.msra.mxu0 %v4290_v29  ;;  %v4427_v27 = vcombine.high %v1125_v22, %v1129_v23  ;;  %v1057_v29 = vld [vmem:[%s6345_s1 + $0x738] sm:$0xff]  ;;  %v4426_v35 = vcombine.low %v1125_v22, %v1129_v23 }
 0x189   : > { %3198 = vmatpush2.bf16.msra.mxu1 %v4226_v30  ;;  %3224 = vmatprep.subr.bf16.mxu0 %v4283_v31  ;;  %v1117_v30 = vld [vmem:[%s6345_s1 + $0x918] sm:$0xff]  ;;  %v4355_v36 = vcombine.high %v1053_v28, %v1057_v29 }
 0x18a   : > { %3199 = vmatprep.subr.bf16.mxu1 %v4219_v33  ;;  %v1121_v31 = vld [vmem:[%s6345_s1 + $0x938] sm:$0xff]  ;;  %v4362_v33 = vcombine.low %v1061_v18, %v1065_v20 }
 0x18b   : > { %v4419_v38 = vcombine.high %v1117_v30, %v1121_v31  ;;  %v4418_v44 = vcombine.low %v1117_v30, %v1121_v31  ;;  %v1085_v8 = vld [vmem:[%s6345_s1 + $0x818] sm:$0xff]  ;;  %v4675_v30 = vld [vmem:[%s5817_s8 + $0xb0] sm:$0xff]  }
 0x18c   : > { %3225 = vmatpush1.bf16.msra.mxu0 %v4282_v39  ;;  %v1049_v39 = vld [vmem:[%s6345_s1 + $0x6f8] sm:$0xff] }
 0x18d   : > { %3200 = vmatpush2.bf16.msra.mxu1 %v4218_v40  ;;  %3226 = vmatprep.subr.bf16.mxu0 %v4275_v41  ;;  %v1109_v40 = vld [vmem:[%s6345_s1 + $0x8d8] sm:$0xff] }
 0x18e   : > { %3201 = vmatprep.subr.bf16.mxu1 %v4211_v42  ;;  %v1113_v41 = vld [vmem:[%s6345_s1 + $0x8f8] sm:$0xff]  ;;  %v4354_v42 = vcombine.low %v1053_v28, %v1057_v29  ;;  %v4665_v28 = vld [vmem:[%s5817_s8 + $0x30] sm:$0xff]   ;;  %v4666_v29 = vld [vmem:[%s5817_s8 + $0x68] sm:$0xff]  }
 0x18f   : > { %v4411_v46 = vcombine.high %v1109_v40, %v1113_v41  ;;  %v4410_v55 = vcombine.low %v1109_v40, %v1113_v41  ;;  %v1089_v58 = vld [vmem:[%s6345_s1 + $0x838] sm:$0xff] }
 0x190   : > { %3227 = vmatpush1.bf16.msra.mxu0 %v4274_v47  ;;  %v1037_v47 = vld [vmem:[%s6345_s1 + $0x698] sm:$0xff]  ;;  %v4386_v18 = vcombine.low %v1085_v8, %v1089_v58 }
 0x191   : > { %3202 = vmatpush2.bf16.msra.mxu1 %v4210_v49  ;;  %3228 = vmatprep.subr.bf16.mxu0 %v4267_v50  ;;  %v1041_v49 = vld [vmem:[%s6345_s1 + $0x6b8] sm:$0xff] }
 0x192   : > { %3203 = vmatprep.subr.bf16.mxu1 %v4203_v53  ;;  %v1101_v50 = vld [vmem:[%s6345_s1 + $0x898] sm:$0xff]  ;;  %v4339_v56 = vcombine.high %v1037_v47, %v1041_v49  ;;  %v4338_v0 = vcombine.low %v1037_v47, %v1041_v49  ;;  %v4689_v47 = vld [vmem:[%s5817_s8 + $0x90] sm:$0xff]   ;;  %v4690_v49 = vld [vmem:[%s5817_s8 + $0xc8] sm:$0xff]  }
 0x193   : > { %v1105_v53 = vld [vmem:[%s6345_s1 + $0x8b8] sm:$0xff] }
 0x194   : > { %3229 = vmatpush1.bf16.msra.mxu0 %v4266_v57  ;;  %v4403_v57 = vcombine.high %v1101_v50, %v1105_v53  ;;  %v4402_v3 = vcombine.low %v1101_v50, %v1105_v53  ;;  %v4662_v20 = vld [vmem:[%s5817_s8 + $0x78] sm:$0xff]   ;;  %v4682_v50 = vld [vmem:[%s5817_s8 + $0x8] sm:$0xff]  }
 0x195   : > { %3204 = vmatpush2.bf16.msra.mxu1 %v4202_v60  ;;  %3230 = vmatprep.subr.bf16.mxu0 %v4259_v61  ;;  %v1029_v60 = vld [vmem:[%s6345_s1 + $0x658] sm:$0xff] }
 0x196   : > { %3205 = vmatprep.subr.bf16.mxu1 %v4195_v62  ;;  %v1033_v61 = vld [vmem:[%s6345_s1 + $0x678] sm:$0xff] }
 0x197   : > { %v1093_v62 = vld [vmem:[%s6345_s1 + $0x858] sm:$0xff]  ;;  %v4330_v9 = vcombine.low %v1029_v60, %v1033_v61 }
 0x198   : > { %3231 = vmatpush1.bf16.msra.mxu0 %v4258_v4  ;;  %v4331_v4 = vcombine.high %v1029_v60, %v1033_v61  ;;  %v4394_v13 = vcombine.low %v1093_v62, %v1097_v63  ;;  %v4669_v11 = vld [vmem:[%s5817_s8 + $0xf8] sm:$0xff]   ;;  %v4686_v60 = vld [vmem:[%s5817_s8] sm:$0xff]  }
 0x199   : > { %3206 = vmatpush2.bf16.msra.mxu1 %v4194_v5  ;;  %3232 = vmatprep.subr.bf16.mxu0 %v4379_v6  ;;  %v4395_v5 = vcombine.high %v1093_v62, %v1097_v63  ;;  %v1021_v6 = vld [vmem:[%s6345_s1 + $0x618] sm:$0xff] }
 0x19a   : > { %3257 = vmatprep.subr.bf16.mxu1 %v4443_v7  ;;  %v1025_v7 = vld [vmem:[%s6345_s1 + $0x638] sm:$0xff] }
 0x19b   : > { %v6130_v21 = vpop.f32.mrf.mxu0  ;;  %v4663_v23 = vld [vmem:[%s5817_s8 + $0x38] sm:$0xff]  }
 0x19c   : > { %3208 = vmatmul.mubr.bf16.vlgmr.msra.gmra.mxu1 %v5391_v16  ;;  %3233 = vmatpush2.bf16.msra.mxu0 %v4378_v59  ;;  %v4323_v59 = vcombine.high %v1021_v6, %v1025_v7  ;;  %v4685_v40 = vld [vmem:[%s5817_s8 + $0xd8] sm:$0xff]   ;;  %v2923_v53 = vadd.f32 %v6130_v21, %v6036_v10  ;;  %v1159_v10 = vrot.slane %v6000_v48, %v1158_v52  ;;  %v4693_v21 = vld [vmem:[%s5817_s8 + $0x80] sm:$0xff]  }
 0x19d   : > { %3258 = vmatpush1.bf16.msra.mxu1 %v4442_v14  ;;  %v6139_v54 = vpop.f32.mrf.mxu0  ;;  %3234 = vmatprep.subr.bf16.mxu0 %v4371_v15  ;;  %v4387_v14 = vcombine.high %v1085_v8, %v1089_v58  ;;  %v4674_v41 = vld [vmem:[%s5817_s8 + $0x18] sm:$0xff]   ;;  %v4697_v58 = vld [vmem:[%s5817_s8 + $0x130] sm:$0xff]  }
 0x19e   : > { %3259 = vmatprep.subr.bf16.mxu1 %v4435_v17  ;;  %3289 = vmatprep.mubr.bf16.mxu1 %v4805_v32  ;;  %v1045_v32 = vld [vmem:[%s6345_s1 + $0x6d8] sm:$0xff]  ;;  %v2925_v15 = vadd.f32 %v6139_v54, %v2884_v12  ;;  %v4322_v17 = vcombine.low %v1021_v6, %v1025_v7  ;;  %v3298_v61 = vmax.f32 %v2923_v53, 0.0  ;;  %v4698_v12 = vld [vmem:[%s5817_s8 + $0x168] sm:$0xff]  }
 0x19f   : > { %v2926_v16 = vpop.f32.mrf.mxu0  ;;  %v4347_v45 = vcombine.high %v1045_v32, %v1049_v39  ;;  %v4346_v51 = vcombine.low %v1045_v32, %v1049_v39  ;;  %v4671_v54 = vld [vmem:[%s5817_s8 + $0xb8] sm:$0xff]   ;;  %v4683_v39 = vld [vmem:[%s5817_s8 + $0xa0] sm:$0xff]  }
 0x1a0   : > { %3235 = vmatpush2.bf16.msra.mxu0 %v4370_v24  ;;  %v3299_v22 = vmax.f32 %v2925_v15, 0.0  ;;  %v4664_v24 = vld [vmem:[%s5817_s8 + $0x70] sm:$0xff]   ;;  %v4672_v32 = vld [vmem:[%s5817_s8 + $0x58] sm:$0xff]   ;;  %v3306_v1 = vpack.c.bf16 %v3298_v61, %v3298_v61 }
 0x1a1   : > { %3260 = vmatpush1.bf16.msra.mxu1 %v4434_v25  ;;  %v2927_v34 = vpop.f32.mrf.mxu0  ;;  %3236 = vmatprep.subr.bf16.mxu0 %v4363_v26  ;;  %v4673_v26 = vld [vmem:[%s5817_s8 + $0xf0] sm:$0xff]   ;;  %v4687_v43 = vld [vmem:[%s5817_s8 + $0x98] sm:$0xff]  }
 0x1a2   : > { %3261 = vmatprep.subr.bf16.mxu1 %v4427_v27  ;;  %v3307_v25 = vpack.c.bf16 %v3299_v22, %v3299_v22  ;;  %v4694_v62 = vld [vmem:[%s5817_s8 + $0x178] sm:$0xff]  }
 0x1a4   : > { %3237 = vmatpush2.bf16.msra.mxu0 %v4362_v33  ;;  %v4668_v33 = vld [vmem:[%s5817_s8 + $0x60] sm:$0xff]  }
 0x1a5   : > { %3262 = vmatpush1.bf16.msra.mxu1 %v4426_v35  ;;  %3238 = vmatprep.subr.bf16.mxu0 %v4355_v36  ;;  %v4679_v35 = vld [vmem:[%s5817_s8 + $0xa8] sm:$0xff]   ;;  %v4681_v36 = vld [vmem:[%s5817_s8 + $0xe0] sm:$0xff]  }
 0x1a6   : > { %3263 = vmatprep.subr.bf16.mxu1 %v4419_v38  ;;  %v4670_v38 = vld [vmem:[%s5817_s8 + $0x20] sm:$0xff]  }
 0x1a8   : > { %3239 = vmatpush2.bf16.msra.mxu0 %v4354_v42  ;;  %v4676_v42 = vld [vmem:[%s5817_s8 + $0x50] sm:$0xff]  }
 0x1a9   : > { %3264 = vmatpush1.bf16.msra.mxu1 %v4418_v44  ;;  %3240 = vmatprep.subr.bf16.mxu0 %v4347_v45  ;;  %v4688_v44 = vld [vmem:[%s5817_s8 + $0xd0] sm:$0xff]  }
 0x1aa   : > { %3265 = vmatprep.subr.bf16.mxu1 %v4411_v46  ;;  %v4678_v45 = vld [vmem:[%s5817_s8 + $0x10] sm:$0xff]   ;;  %v4680_v46 = vld [vmem:[%s5817_s8 + $0x48] sm:$0xff]  }
 0x1ac   : > { %3241 = vmatpush2.bf16.msra.mxu0 %v4346_v51  ;;  %v4684_v51 = vld [vmem:[%s5817_s8 + $0x40] sm:$0xff]  }
 0x1ad   : > { %3266 = vmatpush1.bf16.msra.mxu1 %v4410_v55  ;;  %3242 = vmatprep.subr.bf16.mxu0 %v4339_v56  ;;  %v4691_v55 = vld [vmem:[%s5817_s8 + $0x88] sm:$0xff]   ;;  %v4692_v56 = vld [vmem:[%s5817_s8 + $0xc0] sm:$0xff]  }
 0x1ae   : > { %3267 = vmatprep.subr.bf16.mxu1 %v4403_v57  ;;  %v1162_v57 = vsub.s32 3, %v5982_v37 }
 0x1b0   : > { %3243 = vmatpush2.bf16.msra.mxu0 %v4338_v0  ;;  %v1163_v63 = vrot.slane %v6000_v48, %v1162_v57  ;;  %v4695_v0 = vld [vmem:[%s5817_s8 + $0x138] sm:$0xff]  }
 0x1b1   : > { %3268 = vmatpush1.bf16.msra.mxu1 %v4402_v3  ;;  %3244 = vmatprep.subr.bf16.mxu0 %v4331_v4  ;;  %v4696_v3 = vld [vmem:[%s5817_s8 + $0x170] sm:$0xff]  }
 0x1b2   : > { %3269 = vmatprep.subr.bf16.mxu1 %v4395_v5 }
 0x1b4   : > { %3245 = vmatpush2.bf16.msra.mxu0 %v4330_v9 }
 0x1b5   : > { %3270 = vmatpush1.bf16.msra.mxu1 %v4394_v13  ;;  %3246 = vmatprep.subr.bf16.mxu0 %v4323_v59 }
 0x1b6   : > { %3271 = vmatprep.subr.bf16.mxu1 %v4387_v14 }
 0x1b8   : > { %3247 = vmatpush2.bf16.msra.mxu0 %v4322_v17 }
 0x1b9   : > { %3272 = vmatpush1.bf16.msra.mxu1 %v4386_v18  ;;  %4513 = vmatprep.subr.bf16.mxu0 %v4662_v20  ;;  %v4699_v20 = vld [vmem:[%s5817_s8 + $0x128] sm:$0xff]  }
 0x1ba   : > { %4535 = vmatprep.subr.bf16.mxu1 %v4669_v11 }
 0x1bb   : > { %3249 = vmatmul.mubr.bf16.vlgmr.msra.gmra.mxu0 %v5401_v19  ;;  %v4677_v19 = vld [vmem:[%s5817_s8 + $0xe8] sm:$0xff]  }
 0x1bc   : > { %v6214_v27 = vpop.f32.mrf.mxu1  ;;  %3290 = vmatmul.mubr.bf16.vlgmr.msra.gmra.mxu1 %v6024_v2  ;;  %4514 = vmatpush3.bf16.msra.mxu0 %v4663_v23  ;;  %v4667_v2 = vld [vmem:[%s5817_s8 + $0x28] sm:$0xff]   ;;  %v4700_v23 = vld [vmem:[%s5817_s8 + $0x160] sm:$0xff]  }
 0x1bd   : > { %3865 = vmatprep.mubr.bf16.mxu0 %v3307_v25  ;;  %4515 = vmatprep.subr.bf16.mxu0 %v4664_v24  ;;  %v2964_v4 = vadd.f32 %v6214_v27, %v1159_v10  ;;  %v4710_v25 = vld [vmem:[%s5817_s8 + $0x1f8] sm:$0xff]   ;;  %v4701_v27 = vld [vmem:[%s5817_s8 + $0x120] sm:$0xff]   ;;  %v1170_v10 = vsub.s32 5, %v5982_v37 }
 0x1be   : > { %v6219_v16 = vpop.f32.mrf.mxu1  ;;  %4536 = vmatpush3.bf16.msra.mxu1 %v4671_v54 }
 0x1bf   : > { %4537 = vmatprep.subr.bf16.mxu1 %v4673_v26  ;;  %v2966_v6 = vadd.f32 %v6219_v16, %v1163_v63  ;;  %v4702_v16 = vld [vmem:[%s5817_s8 + $0x158] sm:$0xff]   ;;  %v1171_v63 = vrot.slane %v6000_v48, %v1170_v10 }
 0x1c0   : > { %v2967_v31 = vpop.f32.mrf.mxu1  ;;  %4516 = vmatpush3.bf16.msra.mxu0 %v4665_v28  ;;  %v4711_v28 = vld [vmem:[%s5817_s8 + $0x1b8] sm:$0xff]  }
 0x1c1   : > { %4517 = vmatprep.subr.bf16.mxu0 %v4666_v29  ;;  %v4713_v31 = vld [vmem:[%s5817_s8 + $0x1b0] sm:$0xff]  }
 0x1c2   : > { %v2968_v34 = vpop.f32.mrf.mxu1  ;;  %4538 = vmatpush3.bf16.msra.mxu1 %v4675_v30  ;;  %v4712_v30 = vld [vmem:[%s5817_s8 + $0x1f0] sm:$0xff]  }
 0x1c3   : > { %4539 = vmatprep.subr.bf16.mxu1 %v4677_v19  ;;  %v4703_v19 = vld [vmem:[%s5817_s8 + $0x118] sm:$0xff]   ;;  %v4705_v34 = vld [vmem:[%s5817_s8 + $0x110] sm:$0xff]  }
 0x1c4   : > { %4518 = vmatpush3.bf16.msra.mxu0 %v4667_v2  ;;  %v4704_v2 = vld [vmem:[%s5817_s8 + $0x150] sm:$0xff]  }
 0x1c5   : > { %4519 = vmatprep.subr.bf16.mxu0 %v4668_v33  ;;  %v4714_v33 = vld [vmem:[%s5817_s8 + $0x1e8] sm:$0xff]  }
 0x1c6   : > { %4540 = vmatpush3.bf16.msra.mxu1 %v4679_v35  ;;  %v4715_v35 = vld [vmem:[%s5817_s8 + $0x1a8] sm:$0xff]  }
 0x1c7   : > { %4541 = vmatprep.subr.bf16.mxu1 %v4681_v36  ;;  %v4706_v36 = vld [vmem:[%s5817_s8 + $0x148] sm:$0xff]  }
 0x1c8   : > { %4520 = vmatpush3.bf16.msra.mxu0 %v4670_v38  ;;  %v4716_v38 = vld [vmem:[%s5817_s8 + $0x1e0] sm:$0xff]  }
 0x1c9   : > { %4521 = vmatprep.subr.bf16.mxu0 %v4672_v32  ;;  %v4707_v32 = vld [vmem:[%s5817_s8 + $0x108] sm:$0xff]  }
 0x1ca   : > { %4542 = vmatpush3.bf16.msra.mxu1 %v4683_v39  ;;  %v4717_v39 = vld [vmem:[%s5817_s8 + $0x1a0] sm:$0xff]  }
 0x1cb   : > { %4543 = vmatprep.subr.bf16.mxu1 %v4685_v40  ;;  %v4708_v40 = vld [vmem:[%s5817_s8 + $0x140] sm:$0xff]  }
 0x1cc   : > { %4522 = vmatpush3.bf16.msra.mxu0 %v4674_v41  ;;  %v4718_v41 = vld [vmem:[%s5817_s8 + $0x1d8] sm:$0xff]  }
 0x1cd   : > { %4523 = vmatprep.subr.bf16.mxu0 %v4676_v42  ;;  %v4709_v42 = vld [vmem:[%s5817_s8 + $0x100] sm:$0xff]  }
 0x1ce   : > { %4544 = vmatpush3.bf16.msra.mxu1 %v4687_v43  ;;  %v4719_v43 = vld [vmem:[%s5817_s8 + $0x198] sm:$0xff]  }
 0x1cf   : > { %4545 = vmatprep.subr.bf16.mxu1 %v4688_v44  ;;  %v4720_v44 = vld [vmem:[%s5817_s8 + $0x1d0] sm:$0xff]  }
 0x1d0   : > { %4524 = vmatpush3.bf16.msra.mxu0 %v4678_v45  ;;  %v4721_v45 = vld [vmem:[%s5817_s8 + $0x190] sm:$0xff]  }
 0x1d1   : > { %4525 = vmatprep.subr.bf16.mxu0 %v4680_v46  ;;  %v4722_v46 = vld [vmem:[%s5817_s8 + $0x1c8] sm:$0xff]  }
 0x1d2   : > { %4546 = vmatpush3.bf16.msra.mxu1 %v4689_v47  ;;  %v4723_v47 = vld [vmem:[%s5817_s8 + $0x188] sm:$0xff]  }
 0x1d3   : > { %4547 = vmatprep.subr.bf16.mxu1 %v4690_v49  ;;  %v4724_v49 = vld [vmem:[%s5817_s8 + $0x1c0] sm:$0xff]  }
 0x1d4   : > { %4526 = vmatpush3.bf16.msra.mxu0 %v4682_v50  ;;  %v4725_v50 = vld [vmem:[%s5817_s8 + $0x180] sm:$0xff]   ;;  %s820_s8 = scalar_select %p819_p0, %s4795_s21, 4 }
 0x1d5   : > { %4527 = vmatprep.subr.bf16.mxu0 %v4684_v51  ;;  %s4806_s21 = smov [#allocation3]  }
 0x1d6   : > { %4548 = vmatpush3.bf16.msra.mxu1 %v4691_v55  ;;  %s821_s16 = scalar_lea.vmem %s6348_s4, %s820_s8  ;;  %s4731_s12 = sshll.u32 %s4806_s21, 4  ;;  %s4732_s12 = int_to_ptr.vmem [resolvable:$false] %s4731_s12 }
 0x1d7   : > { %4549 = vmatprep.subr.bf16.mxu1 %v4692_v56  ;;  %s4733_s8 = scalar_lea.vmem %s4732_s12, 256  ;;  %p4734_p4 = scmp.lt.s32.totalorder %s4011_s27, %s4732_s12 }
 0x1d8   : > { %4528 = vmatpush3.bf16.msra.mxu0 %v4686_v60  ;;  %p4735_p6 = scmp.lt.s32.totalorder %s4733_s8, %s4727_s11 }
 0x1d9   : > { %4557 = vmatprep.subr.bf16.mxu0 %v4694_v62  ;;  %v1166_v62 = vsub.s32 4, %v5982_v37 }
 0x1da   : > { %4550 = vmatpush3.bf16.msra.mxu1 %v4693_v21  ;;  %p4736_p7 = por %p4735_p6, %p4734_p4 }
 0x1db   : > { %v3004_v5 = vpop.f32.mrf.mxu0  ;;  %3866 = vmatmul.mubr.bf16.vlgmr.msra.gmra.mxu0 %v3306_v1  ;;  %4579 = vmatprep.subr.bf16.mxu1 %v4710_v25  ;;  %v1167_v21 = vrot.slane %v6000_v48, %v1166_v62 }
 0x1dc   : > { %v3005_v7 = vadd.f32 %v3004_v5, %v2964_v4  ;;  %v3045_v8 = vpop.f32.mrf.mxu1  ;;  %4558 = vmatpush3.bf16.msra.mxu0 %v4695_v0  ;;  %p4737_p8 = pnand %p4736_p7, %p4730_p3 }
 0x1dd   : > { %v3006_v9 = vpop.f32.mrf.mxu0  ;;  %4559 = vmatprep.subr.bf16.mxu0 %v4696_v3 }
 0x1de   : > { %v3046_v13 = vadd.f32 %v3045_v8, %v3005_v7  ;;  %v3007_v59 = vadd.f32 %v3006_v9, %v2966_v6  ;;  %v3047_v14 = vpop.f32.mrf.mxu1 }
 0x1df   : > { %v3008_v15 = vpop.f32.mrf.mxu0 }
 0x1e0   : > { %v3048_v17 = vadd.f32 %v3047_v14, %v3007_v59  ;;  %v3049_v18 = vpop.f32.mrf.mxu1  ;;  %4560 = vmatpush3.bf16.msra.mxu0 %v4697_v58  ;;  %v3300_v11 = vmax.f32 %v3046_v13, 0.0 }
 0x1e1   : > { %v3009_v22 = vpop.f32.mrf.mxu0  ;;  %4561 = vmatprep.subr.bf16.mxu0 %v4698_v12 }
 0x1e2   : > { %v3301_v24 = vmax.f32 %v3048_v17, 0.0  ;;  %v3050_v54 = vpop.f32.mrf.mxu1  ;;  %v3308_v29 = vpack.c.bf16 %v3300_v11, %v3300_v11  ;;  %v1174_v11 = vsub.s32 6, %v5982_v37  ;;  %v1178_v22 = vsub.s32 7, %v5982_v37 }
 0x1e4   : > { %v3309_v26 = vpack.c.bf16 %v3301_v24, %v3301_v24  ;;  %4562 = vmatpush3.bf16.msra.mxu0 %v4699_v20  ;;  %v1179_v24 = vrot.slane %v6000_v48, %v1178_v22 }
 0x1e5   : > { %4563 = vmatprep.subr.bf16.mxu0 %v4700_v23  ;;  %v1175_v23 = vrot.slane %v6000_v48, %v1174_v11 }
 0x1e6   : > { %3905 = vmatprep.mubr.bf16.mxu1 %v3309_v26 }
 0x1e7   : > { %3906 = vmatmul.mubr.bf16.vlgmr.msra.gmra.mxu1 %v3308_v29 }
 0x1e8   : > { %4564 = vmatpush3.bf16.msra.mxu0 %v4701_v27  ;;  %4580 = vmatpush3.bf16.msra.mxu1 %v4711_v28 }
 0x1e9   : > { %4565 = vmatprep.subr.bf16.mxu0 %v4702_v16  ;;  %4581 = vmatprep.subr.bf16.mxu1 %v4712_v30 }
 0x1ec   : > { %4566 = vmatpush3.bf16.msra.mxu0 %v4703_v19  ;;  %4582 = vmatpush3.bf16.msra.mxu1 %v4713_v31 }
 0x1ed   : > { %4567 = vmatprep.subr.bf16.mxu0 %v4704_v2  ;;  %4583 = vmatprep.subr.bf16.mxu1 %v4714_v33 }
 0x1f0   : > { %4568 = vmatpush3.bf16.msra.mxu0 %v4705_v34  ;;  %4584 = vmatpush3.bf16.msra.mxu1 %v4715_v35 }
 0x1f1   : > { %4569 = vmatprep.subr.bf16.mxu0 %v4706_v36  ;;  %4585 = vmatprep.subr.bf16.mxu1 %v4716_v38 }
 0x1f4   : > { %4570 = vmatpush3.bf16.msra.mxu0 %v4707_v32  ;;  %4586 = vmatpush3.bf16.msra.mxu1 %v4717_v39 }
 0x1f5   : > { %4571 = vmatprep.subr.bf16.mxu0 %v4708_v40  ;;  %4587 = vmatprep.subr.bf16.mxu1 %v4718_v41 }
 0x1f8   : > { %4572 = vmatpush3.bf16.msra.mxu0 %v4709_v42  ;;  %4588 = vmatpush3.bf16.msra.mxu1 %v4719_v43  ;;  %v4444_v43 = vld [vmem:[%s821_s16] ss:$0 sm:$0xff] }
 0x1f9   : > { %4589 = vmatprep.subr.bf16.mxu1 %v4720_v44 }
 0x1fc   : > { %4590 = vmatpush3.bf16.msra.mxu1 %v4721_v45 }
 0x1fd   : > { %4591 = vmatprep.subr.bf16.mxu1 %v4722_v46 }
 0x200   : > { %4592 = vmatpush3.bf16.msra.mxu1 %v4723_v47 }
 0x201   : > { %4593 = vmatprep.subr.bf16.mxu1 %v4724_v49 }
 0x204   : > { %4594 = vmatpush3.bf16.msra.mxu1 %v4725_v50 }
 0x21b   : > { %v3086_v53 = vpop.f32.mrf.mxu0 }
 0x21c   : > { %v3127_v51 = vpop.f32.mrf.mxu1  ;;  %v3087_v0 = vadd.f32 %v3086_v53, %v1167_v21 }
 0x21d   : > { %v3088_v52 = vpop.f32.mrf.mxu0 }
 0x21e   : > { %v3129_v55 = vpop.f32.mrf.mxu1  ;;  %v3089_v1 = vadd.f32 %v3088_v52, %v1171_v63  ;;  %v3128_v3 = vadd.f32 %v3127_v51, %v3087_v0 }
 0x21f   : > { %v3090_v56 = vpop.f32.mrf.mxu0 }
 0x220   : > { %v3131_v57 = vpop.f32.mrf.mxu1  ;;  %v3130_v5 = vadd.f32 %v3129_v55, %v3089_v1 }
 0x221   : > { %v3091_v60 = vpop.f32.mrf.mxu0 }
 0x222   : > { %v3132_v61 = vpop.f32.mrf.mxu1 }
 0x23b   : > { %v3168_v4 = vpop.f32.mrf.mxu0 }
 0x23c   : > { %v3169_v6 = vadd.f32 %v3168_v4, %v3128_v3 }
 0x23d   : > { %v3170_v7 = vpop.f32.mrf.mxu0 }
 0x23e   : > { %v3171_v8 = vadd.f32 %v3170_v7, %v3130_v5  ;;  %v3302_v58 = vmax.f32 %v3169_v6, 0.0 }
 0x23f   : > { %v3172_v9 = vpop.f32.mrf.mxu0 }
 0x240   : > { %v3303_v12 = vmax.f32 %v3171_v8, 0.0  ;;  %v3310_v14 = vpack.c.bf16 %v3302_v58, %v3302_v58 }
 0x241   : > { %v3173_v13 = vpop.f32.mrf.mxu0 }
 0x242   : > { %v3311_v59 = vpack.c.bf16 %v3303_v12, %v3303_v12 }
 0x244   : > { %3945 = vmatprep.mubr.bf16.mxu0 %v3311_v59 }
 0x245   : > { %3946 = vmatmul.mubr.bf16.vlgmr.msra.gmra.mxu0 %v3310_v14 }
 0x25c   : > { %v3209_v15 = vpop.f32.mrf.mxu1 }
 0x25d   : > { %v3210_v54 = vadd.f32 %v3209_v15, %v1175_v23 }
 0x25e   : > { %v3211_v17 = vpop.f32.mrf.mxu1 }
 0x25f   : > { %v3212_v26 = vadd.f32 %v3211_v17, %v1179_v24 }
 0x260   : > { %v3213_v18 = vpop.f32.mrf.mxu1 }
 0x262   : > { %v3214_v20 = vpop.f32.mrf.mxu1 }
 0x27b   : > { %v3250_v25 = vpop.f32.mrf.mxu0 }
 0x27c   : > { %v3251_v27 = vadd.f32 %v3250_v25, %v3210_v54  ;;  %v3291_v28 = vpop.f32.mrf.mxu1 }
 0x27d   : > { %v3252_v29 = vpop.f32.mrf.mxu0 }
 0x27e   : > { %v3292_v16 = vadd.f32 %v3291_v28, %v3251_v27  ;;  %v3253_v30 = vadd.f32 %v3252_v29, %v3212_v26  ;;  %v3293_v19 = vpop.f32.mrf.mxu1 }
 0x27f   : > { %v3254_v31 = vpop.f32.mrf.mxu0 }
 0x280   : > { %v3294_v2 = vadd.f32 %v3293_v19, %v3253_v30  ;;  %v3295_v33 = vpop.f32.mrf.mxu1  ;;  %v3304_v34 = vmax.f32 %v3292_v16, 0.0 }
 0x281   : > { %v3255_v37 = vpop.f32.mrf.mxu0 }
 0x282   : > { %v3305_v35 = vmax.f32 %v3294_v2, 0.0  ;;  %v3296_v36 = vpop.f32.mrf.mxu1  ;;  %v3312_v48 = vpack.c.bf16 %v3304_v34, %v3304_v34 }
 0x284   : > { %v3313_v38 = vpack.c.bf16 %v3305_v35, %v3305_v35 }
 0x286   : > { %3985 = vmatprep.mubr.bf16.mxu1 %v3313_v38 }
 0x287   : > { %3986 = vmatmul.mubr.bf16.vlgmr.msra.gmra.mxu1 %v3312_v48 }
 0x29b   : > { %v4529_v32 = vpop.f32.mrf.mxu0 }
 0x29d   : > { %v4530_v39 = vpop.f32.mrf.mxu0 }
 0x29e   : > { %v4531_v40 = vadd.f32 %v4530_v39, %v4529_v32 }
 0x29f   : > { %v4532_v41 = vpop.f32.mrf.mxu0 }
 0x2a0   : > { %v3868_v46 = vadd.f32 %v4531_v40, %v4444_v43 }
 0x2a1   : > { %v4533_v42 = vpop.f32.mrf.mxu0 }
 0x2a7   : > { %v4551_v44 = vpop.f32.mrf.mxu1 }
 0x2a9   : > { %v4552_v45 = vpop.f32.mrf.mxu1 }
 0x2aa   : > { %v4553_v47 = vadd.f32 %v4552_v45, %v4551_v44 }
 0x2ab   : > { %v4554_v49 = vpop.f32.mrf.mxu1 }
 0x2ac   : > { %v3908_v50 = vadd.f32 %v4553_v47, %v3868_v46 }
 0x2ad   : > { %v4555_v53 = vpop.f32.mrf.mxu1 }
 0x305   : > { %v4573_v51 = vpop.f32.mrf.mxu0 }
 0x307   : > { %v4574_v52 = vpop.f32.mrf.mxu0 }
 0x308   : > { %v4575_v55 = vadd.f32 %v4574_v52, %v4573_v51 }
 0x309   : > { %v4576_v56 = vpop.f32.mrf.mxu0 }
 0x30a   : > { %v3948_v57 = vadd.f32 %v4575_v55, %v3908_v50 }
 0x30b   : > { %v4577_v60 = vpop.f32.mrf.mxu0 }
 0x347   : > { %v4595_v61 = vpop.f32.mrf.mxu1 }
 0x349   : > { %v4596_v62 = vpop.f32.mrf.mxu1 }
 0x34a   : > { %v4597_v10 = vadd.f32 %v4596_v62, %v4595_v61 }
 0x34b   : > { %v4598_v21 = vpop.f32.mrf.mxu1 }
 0x34c   : > { %v3988_v63 = vadd.f32 %v4597_v10, %v3948_v57 }
 0x34d   : > { %v4599_v0 = vpop.f32.mrf.mxu1 }
 0x34e   : > { %3993 = vst [vmem:[%s813_s25] sm:$0xff] %v3988_v63 }
 0x34f   : > { %4740 = shalt.err (!%p4737_p8)
}
 0x350   : > { %s4741_s13 = scalar_lea.hbm %s6303_s9, 128  ;;  %s4745_s16 = scalar_lea.hbm %s6349_s5, 640 }
 0x351   : > { %p4742_p10 = scmp.ne.s32.totalorder %s6303_s9, %s4741_s13  ;;  %p4746_p13 = scmp.lt.s32.totalorder %s6303_s9, %s6349_s5 }
 0x352   : > { %p4747_p0 = scmp.lt.s32.totalorder %s4745_s16, %s4741_s13 }
 0x353   : > { %p4743_p11 = pnand %p4742_p10, %p4876_p5 }
 0x354   : > { %p4748_p1 = por %p4747_p0, %p4746_p13 }
 0x355   : > { %p4744_p12 = pneg %p4743_p11 }
 0x357   : > { %p4749_p2 = pnand %p4748_p1, %p4744_p12 }
 0x359   : > { %4752 = shalt.err (!%p4749_p2)
}
 0x35a   : > { %4601 = dma.vmem_to_hbm [thread:$0]  (%p4876_p5), %s4011_s27, 128, %s6303_s9, %s3995_s10  }
 0x35b PF: > { %p4607_p3 = scmp.ge.s32.totalorder %s4803_s23, 2  ;;  %s4022_s25 = sand.u32 1, %s4783_s18  }
 0x35c   : > { %s4023_s29 = scalar_lea.sflag [#allocation4], %s4022_s25 }
 0x35d   : > { %p4604_p4 = pnand %p4607_p3, %p4887_p9 }
 0x35f   : > { %p4605_p6 = pneg %p4604_p4 }
 0x361   : > { %4778 = dma.done.wait (%p4605_p6), %s4023_s29, 128  }
 0x362   : > { %4780 = vsyncadd (%p4605_p6), %s4023_s29, 4294967168  ;;  %s18_s23 = sadd.s32 1, %s4803_s23   ;;  %s6352_s18 = smov %s4787_s19 }
 0x363   : > { %p15_p7 = scmp.ge.s32.totalorder %s18_s23, 7   ;;  %s6353_s19 = smov %s4791_s20 }
 0x364   : > { %s6354_s20 = smov %s4885_s30  ;;  %s6355_s21 = smov %s4799_s22 }
 0x365   : > { %s6356_s22 = smov %s6358_s26  ;;  %17 = sbr.rel (!%p15_p7) target bundleno = 4 (0x4), region = 127 }
 0x36a   :  { %4028 = vsyncpa [#allocation4], 1 }
 0x36b   :  { %4030 = vsyncpa [#allocation4 + $0x1], 1 }

</bundles_post_ra>
